<compile_context>
chip_gen: v7x
topology: tpu7x:2x2x1
jax: 0.10.0
libtpu: 0.0.40
codegen_flags: <defaults>
</compile_context>

<pallas_src>
import functools
import math

import jax
import jax.numpy as jnp
from jax.experimental import pallas as pl
from jax.experimental.pallas import tpu as pltpu


# ----------------------------------------------------------------------------
# Pallas kernel: fused fc1 + sigmoid + locally-connected chain
# ----------------------------------------------------------------------------
def _dagma_kernel(x_ref, w1t_ref, b1_ref, *refs, d, num_mid,
                  last_blockdiag, fc1_on_vpu):
    """refs = (mid_w_0, mid_b_0, ..., mid_w_{L-1}, mid_b_{L-1},
               w_last, b_last, out)"""
    out_ref = refs[-1]
    w_last_ref = refs[2 * num_mid]
    b_last_ref = refs[2 * num_mid + 1]

    x = x_ref[...]
    w1t = w1t_ref[...]

    if fc1_on_vpu:
        # fc1 on the VPU: d unrolled broadcast-FMAs over the [tn, d*m1] slab.
        # K = d <= 16 would starve the MXU; this keeps the MXU free for the
        # block-diagonal LocallyConnected matmuls below.
        h = x[:, 0:1].astype(jnp.float32) * w1t[0:1, :].astype(jnp.float32)
        for k in range(1, d):
            h = h + (x[:, k:k + 1].astype(jnp.float32)
                     * w1t[k:k + 1, :].astype(jnp.float32))
        h = h + b1_ref[...]
    else:
        # fc1: [tn, d] @ [d, d*m1] + bias (weights resident, bf16-in/f32-acc
        # when packed with use_bf16=True).
        h = jnp.dot(x.astype(w1t.dtype), w1t,
                    preferred_element_type=jnp.float32) + b1_ref[...]

    # Intermediate LocallyConnected layers (only present when len(dims) > 3).
    # NOTE: sigmoid stays f32; cast to bf16 here only if profiling shows the
    # EUP slot saturating (v6e/v7x).
    for l in range(num_mid):
        w_ref = refs[2 * l]
        b_ref = refs[2 * l + 1]
        s = jax.nn.sigmoid(h)
        if len(w_ref.shape) == 2:
            # Block-diagonal weight: one MXU matmul on the flat [tn, d*m_in]
            # slab -- no lane-crossing reshapes between layers.
            h = jnp.dot(s.astype(w_ref.dtype), w_ref[...],
                        preferred_element_type=jnp.float32) + b_ref[...]
        else:
            # TODO(synk): fallback for very large d*m (block-diag would not
            # fit VMEM); keeps flat<->3-D relayouts and d tiny matmuls.
            _, m_in, m_out = w_ref.shape
            s3 = s.reshape(s.shape[0], d, m_in)
            h3 = jnp.einsum('ndi,dik->ndk', s3,
                            w_ref[...].astype(jnp.float32),
                            preferred_element_type=jnp.float32)
            h3 = h3 + b_ref[...][None]
            h = h3.reshape(s.shape[0], d * m_out)

    # Final LocallyConnected layer (m_out == 1).
    s = jax.nn.sigmoid(h)                                    # [tn, d*m_last]
    if last_blockdiag:
        # Pre-packed [d*m_last, d] block-diagonal -> one small MXU matmul
        # yields [tn, d] directly: no lane-crossing reshape and no cross-lane
        # reduction.  The MXU is otherwise idle here, so its sparsity is free.
        acc = jnp.dot(s.astype(w_last_ref.dtype), w_last_ref[...],
                      preferred_element_type=jnp.float32)
    else:
        # Fallback (huge d*m_last): VPU multiply + reduce over m_last.
        m_last = w_last_ref.shape[1]
        s3 = s.reshape(s.shape[0], d, m_last)
        acc = jnp.sum(s3 * w_last_ref[...][None].astype(jnp.float32), axis=-1)

    out_ref[...] = (acc + b_last_ref[...]).astype(out_ref.dtype)


# ----------------------------------------------------------------------------
# One-time parameter packing (call once, reuse across forward steps)
# ----------------------------------------------------------------------------
def _block_diag(w):
    """[d, m_in, m_out] LocallyConnected weight -> [d*m_in, d*m_out] block-diag."""
    d, mi, mo = w.shape
    eye = jnp.eye(d, dtype=w.dtype)
    b = jnp.einsum('jik,jl->jilk', w, eye)        # [d, m_in, d, m_out]
    return b.reshape(d * mi, d * mo)


def pack_dagma_params(w1, b1, lc_ws, lc_bs, *, blockdiag_max=1024,
                      use_bf16=False):
    """Pack DagmaMLP parameters for the kernel. Do this once, not per step.

    use_bf16: store matmul weights in bf16 (f32 accumulation in-kernel) --
    roughly doubles MXU throughput on v6e/v7x and halves resident VMEM;
    biases stay f32.
    """
    assert len(lc_ws) >= 1 and lc_ws[-1].shape[-1] == 1
    d = w1.shape[1]
    wdt = jnp.bfloat16 if use_bf16 else jnp.float32

    w1t = jnp.asarray(w1, jnp.float32).T.astype(wdt)          # [d, d*m1]
    b1r = jnp.asarray(b1, jnp.float32).reshape(1, -1)         # [1, d*m1]

    mids = []
    for w, b in zip(lc_ws[:-1], lc_bs[:-1]):
        w = jnp.asarray(w, jnp.float32)
        b = jnp.asarray(b, jnp.float32)
        _, m_in, m_out = w.shape
        if d * m_in <= blockdiag_max and d * m_out <= blockdiag_max:
            mids.append((_block_diag(w).astype(wdt), b.reshape(1, -1)))
        else:
            # keep raw [d, m_in, m_out] / [d, m_out]; kernel uses einsum fallback
            mids.append((w, b))

    w_last3 = jnp.asarray(lc_ws[-1], jnp.float32)              # [d, m_last, 1]
    b_last = jnp.asarray(lc_bs[-1], jnp.float32)[:, 0].reshape(1, -1)  # [1, d]
    m_last = w_last3.shape[1]
    last_blockdiag = d * m_last <= blockdiag_max
    if last_blockdiag:
        w_last = _block_diag(w_last3).astype(wdt)              # [d*m_last, d]
    else:
        w_last = w_last3[..., 0]                               # [d, m_last]

    return dict(d=d, w1t=w1t, b1=b1r, mids=tuple(mids),
                w_last=w_last, b_last=b_last,
                last_blockdiag=last_blockdiag)


# ----------------------------------------------------------------------------
# Wrapper
# ----------------------------------------------------------------------------
def _round_up(v, m):
    return ((v + m - 1) // m) * m


def _resident_spec(arr, single_buffer):
    """Constant-index (weights-resident) BlockSpec; optionally single-buffered."""
    zeros = (0,) * arr.ndim
    if single_buffer:
        # Never re-fetched -> single buffering halves resident VMEM (v7x).
        return pl.BlockSpec(arr.shape, lambda i, _z=zeros: _z,
                            pipeline_mode=pl.Buffered(1))
    return pl.BlockSpec(arr.shape, lambda i, _z=zeros: _z)


def _pick_tile(n, tn):
    if tn is not None:
        return _round_up(min(tn, n), 8)
    # Per-row work is tiny, so big tiles amortize the ~0.35 us/step pipeline
    # overhead; but keep >= 2 grid steps when the batch allows so v7x's two
    # TensorCores can both be used on the "parallel" axis.
    if n <= 16:
        return _round_up(n, 8)
    return min(2048, _round_up((n + 1) // 2, 8))


def _vmem_limit_bytes(resident_arrays, stream_tile_bytes):
    """Derive vmem limit from actual bytes + per-chip physical VMEM."""
    resident = sum(int(a.size) * a.dtype.itemsize for a in resident_arrays)
    # streaming x/out tiles are double-buffered; + headroom for intermediates
    # and compiler-internal scratch.
    need = resident + 2 * stream_tile_bytes + (16 << 20)
    try:
        phys = int(pltpu.get_tpu_info().vmem_capacity_bytes)
    except Exception:
        phys = 64 << 20          # conservative: v7x physical VMEM per core
    return int(min(max(need, 32 << 20), (phys * 3) // 4))


def _forward_impl(x_pad, packed, tn, single_buffer):
    n_pad, d = x_pad.shape
    residents = [packed['w1t'], packed['b1']]
    for w, b in packed['mids']:
        residents += [w, b]
    residents += [packed['w_last'], packed['b_last']]

    inputs = [x_pad] + residents
    in_specs = [pl.BlockSpec((tn, d), lambda i: (i, 0))]    # only x streams
    in_specs += [_resident_spec(a, single_buffer) for a in residents]

    kernel = functools.partial(
        _dagma_kernel, d=d, num_mid=len(packed['mids']),
        last_blockdiag=packed['last_blockdiag'],
        fc1_on_vpu=(d <= 16))

    out = pl.pallas_call(
        kernel,
        out_shape=jax.ShapeDtypeStruct((n_pad, d), jnp.float32),
        grid_spec=pltpu.PrefetchScalarGridSpec(
            num_scalar_prefetch=0,
            grid=(n_pad // tn,),
            in_specs=in_specs,
            out_specs=pl.BlockSpec((tn, d), lambda i: (i, 0)),
        ),
        compiler_params=pltpu.CompilerParams(
            dimension_semantics=("parallel",),
            vmem_limit_bytes=_vmem_limit_bytes(
                residents, stream_tile_bytes=2 * tn * d * 4),
        ),
    )(*inputs)
    return out


def dagma_mlp_forward(x, packed, *, tn=None):
    n, d = x.shape
    assert d == packed['d']
    x = x.astype(jnp.float32)

    tn = _pick_tile(n, tn)
    pad = (-n) % tn                       # pad ragged batches (never drop rows)
    if pad:
        x = jnp.pad(x, ((0, pad), (0, 0)))

    try:
        out = _forward_impl(x, packed, tn, single_buffer=True)
    except Exception:
        # TODO(synk): fallback for jax versions that reject pl.Buffered(1) on
        # resident blocks; default double-buffering is correct, just uses 2x
        # VMEM for the weights.
        out = _forward_impl(x, packed, tn, single_buffer=False)
    return out[:n] if pad else out


# ----------------------------------------------------------------------------
# Pure-JAX reference (mirrors the PyTorch forward exactly)
# ----------------------------------------------------------------------------
def dagma_mlp_reference(x, w1, b1, lc_ws, lc_bs, dims):
    d, m1 = dims[0], dims[1]
    h = x @ w1.T + b1                              # fc1
    h = h.reshape(-1, d, m1)                       # view(-1, d, m1)
    for w, b in zip(lc_ws, lc_bs):
        h = jax.nn.sigmoid(h)
        # torch.matmul(h.unsqueeze(2), w.unsqueeze(0)).squeeze(2) + b
        h = jnp.einsum('ndi,dik->ndk', h, w) + b[None]
    return h[..., 0]                               # squeeze(dim=2)


# ----------------------------------------------------------------------------
# Deterministic parameter construction (shapes per DagmaMLP.__init__)
# ----------------------------------------------------------------------------
def make_params(key, dims, dtype=jnp.float32):
    d, m1 = dims[0], dims[1]
    k_w1, k_b1, key = jax.random.split(key, 3)
    # NOTE: the module zero-inits fc1; use small deterministic random values
    # here so the kernel's hot path is actually exercised.
    w1 = 0.1 * jax.random.normal(k_w1, (d * m1, d), dtype)
    b1 = 0.1 * jax.random.normal(k_b1, (d * m1,), dtype)

    lc_ws, lc_bs = [], []
    for l in range(len(dims) - 2):
        m_in, m_out = dims[l + 1], dims[l + 2]
        bound = math.sqrt(1.0 / m_in)
        kw, kb, key = jax.random.split(key, 3)
        lc_ws.append(jax.random.uniform(kw, (d, m_in, m_out), dtype,
                                        minval=-bound, maxval=bound))
        lc_bs.append(jax.random.uniform(kb, (d, m_out), dtype,
                                        minval=-bound, maxval=bound))
    return w1, b1, lc_ws, lc_bs


if __name__ == "__main__":
    key = jax.random.PRNGKey(0)
    k_x1, k_x2, k_x3, k_p, k_p3 = jax.random.split(key, 5)

    # ----- Case 1: dims=(d=8, m1=16, 1), batch 256, default tiling (2 tiles).
    dims = (8, 16, 1)
    w1, b1, lc_ws, lc_bs = make_params(k_p, dims)
    packed = pack_dagma_params(w1, b1, lc_ws, lc_bs)   # one-time packing, f32

    n1 = 256
    x1 = jax.random.normal(k_x1, (n1, dims[0]), jnp.float32)
    out1 = jax.block_until_ready(dagma_mlp_forward(x1, packed))
    ref1 = dagma_mlp_reference(x1, w1, b1, lc_ws, lc_bs, dims)
    assert out1.shape == (n1, dims[0])
    assert jnp.allclose(out1, ref1, atol=1e-5, rtol=1e-5), \
        f"case1 max err {jnp.max(jnp.abs(out1 - ref1))}"

    # ----- Case 2: ragged batch + explicit tiling -> padding / multi-step grid.
    n2 = 250
    x2 = jax.random.normal(k_x2, (n2, dims[0]), jnp.float32)
    out2 = jax.block_until_ready(dagma_mlp_forward(x2, packed, tn=128))
    ref2 = dagma_mlp_reference(x2, w1, b1, lc_ws, lc_bs, dims)
    assert out2.shape == (n2, dims[0])
    assert jnp.allclose(out2, ref2, atol=1e-5, rtol=1e-5), \
        f"case2 max err {jnp.max(jnp.abs(out2 - ref2))}"

    # ----- Case 3: intermediate LocallyConnected layer (block-diag MXU path).
    dims3 = (8, 16, 8, 1)
    w1_3, b1_3, lc_ws3, lc_bs3 = make_params(k_p3, dims3)
    packed3 = pack_dagma_params(w1_3, b1_3, lc_ws3, lc_bs3)
    n3 = 64
    x3 = jax.random.normal(k_x3, (n3, dims3[0]), jnp.float32)
    out3 = jax.block_until_ready(dagma_mlp_forward(x3, packed3))
    ref3 = dagma_mlp_reference(x3, w1_3, b1_3, lc_ws3, lc_bs3, dims3)
    assert out3.shape == (n3, dims3[0])
    assert jnp.allclose(out3, ref3, atol=1e-5, rtol=1e-5), \
        f"case3 max err {jnp.max(jnp.abs(out3 - ref3))}"

    # ----- Case 4: bf16 weights/operands (v6e/v7x MXU path), relaxed tolerance.
    packed_bf16 = pack_dagma_params(w1, b1, lc_ws, lc_bs, use_bf16=True)
    out4 = jax.block_until_ready(dagma_mlp_forward(x1, packed_bf16))
    assert out4.shape == (n1, dims[0])
    assert jnp.allclose(out4, ref1, atol=3e-2, rtol=3e-2), \
        f"case4 (bf16) max err {jnp.max(jnp.abs(out4 - ref1))}"

    print("KERNEL_OK")
</pallas_src>

<mosaic_0001>
module attributes {stable_mosaic.version = 11 : i64} {
  func.func @_dagma_kernel(%arg0: i32, %arg1: memref<128x8xf32, #tpu.memory_space<vmem>>, %arg2: memref<8x128xf32, #tpu.memory_space<vmem>>, %arg3: memref<1x128xf32, #tpu.memory_space<vmem>>, %arg4: memref<128x8xf32, #tpu.memory_space<vmem>>, %arg5: memref<1x8xf32, #tpu.memory_space<vmem>>, %arg6: memref<128x8xf32, #tpu.memory_space<vmem>>) attributes {dimension_semantics = [#tpu.dimension_semantics<parallel>], iteration_bounds = array<i64: 2>, scalar_prefetch = 0 : i64, scratch_operands = 0 : i64, tpu.core_type = #tpu.core_type<tc>, window_params = [{transform_indices = @transform_0, window_bounds = array<i64: 128, 8>}, {pipeline_mode = #tpu.pipeline_mode<synchronous>, transform_indices = @transform_1, window_bounds = array<i64: 8, 128>}, {pipeline_mode = #tpu.pipeline_mode<synchronous>, transform_indices = @transform_2, window_bounds = array<i64: 1, 128>}, {pipeline_mode = #tpu.pipeline_mode<synchronous>, transform_indices = @transform_3, window_bounds = array<i64: 128, 8>}, {pipeline_mode = #tpu.pipeline_mode<synchronous>, transform_indices = @transform_4, window_bounds = array<i64: 1, 8>}, {transform_indices = @transform_5, window_bounds = array<i64: 128, 8>}]} {
    %c0 = arith.constant 0 : index
    %c0_0 = arith.constant 0 : index
    %0 = vector.load %arg1[%c0, %c0_0] : memref<128x8xf32, #tpu.memory_space<vmem>>, vector<128x8xf32>
    %c0_1 = arith.constant 0 : index
    %c0_2 = arith.constant 0 : index
    %1 = vector.load %arg2[%c0_1, %c0_2] : memref<8x128xf32, #tpu.memory_space<vmem>>, vector<8x128xf32>
    %2 = vector.extract_strided_slice %0 {offsets = [0, 0], sizes = [128, 1], strides = [1, 1]} : vector<128x8xf32> to vector<128x1xf32>
    %3 = vector.extract_strided_slice %1 {offsets = [0, 0], sizes = [1, 128], strides = [1, 1]} : vector<8x128xf32> to vector<1x128xf32>
    %4 = vector.broadcast %2 : vector<128x1xf32> to vector<128x128xf32>
    %5 = vector.broadcast %3 : vector<1x128xf32> to vector<128x128xf32>
    %6 = arith.mulf %4, %5 : vector<128x128xf32>
    %7 = vector.extract_strided_slice %0 {offsets = [0, 1], sizes = [128, 1], strides = [1, 1]} : vector<128x8xf32> to vector<128x1xf32>
    %8 = vector.extract_strided_slice %1 {offsets = [1, 0], sizes = [1, 128], strides = [1, 1]} : vector<8x128xf32> to vector<1x128xf32>
    %9 = vector.broadcast %7 : vector<128x1xf32> to vector<128x128xf32>
    %10 = vector.broadcast %8 : vector<1x128xf32> to vector<128x128xf32>
    %11 = arith.mulf %9, %10 : vector<128x128xf32>
    %12 = arith.addf %6, %11 : vector<128x128xf32>
    %13 = vector.extract_strided_slice %0 {offsets = [0, 2], sizes = [128, 1], strides = [1, 1]} : vector<128x8xf32> to vector<128x1xf32>
    %14 = vector.extract_strided_slice %1 {offsets = [2, 0], sizes = [1, 128], strides = [1, 1]} : vector<8x128xf32> to vector<1x128xf32>
    %15 = vector.broadcast %13 : vector<128x1xf32> to vector<128x128xf32>
    %16 = vector.broadcast %14 : vector<1x128xf32> to vector<128x128xf32>
    %17 = arith.mulf %15, %16 : vector<128x128xf32>
    %18 = arith.addf %12, %17 : vector<128x128xf32>
    %19 = vector.extract_strided_slice %0 {offsets = [0, 3], sizes = [128, 1], strides = [1, 1]} : vector<128x8xf32> to vector<128x1xf32>
    %20 = vector.extract_strided_slice %1 {offsets = [3, 0], sizes = [1, 128], strides = [1, 1]} : vector<8x128xf32> to vector<1x128xf32>
    %21 = vector.broadcast %19 : vector<128x1xf32> to vector<128x128xf32>
    %22 = vector.broadcast %20 : vector<1x128xf32> to vector<128x128xf32>
    %23 = arith.mulf %21, %22 : vector<128x128xf32>
    %24 = arith.addf %18, %23 : vector<128x128xf32>
    %25 = vector.extract_strided_slice %0 {offsets = [0, 4], sizes = [128, 1], strides = [1, 1]} : vector<128x8xf32> to vector<128x1xf32>
    %26 = vector.extract_strided_slice %1 {offsets = [4, 0], sizes = [1, 128], strides = [1, 1]} : vector<8x128xf32> to vector<1x128xf32>
    %27 = vector.broadcast %25 : vector<128x1xf32> to vector<128x128xf32>
    %28 = vector.broadcast %26 : vector<1x128xf32> to vector<128x128xf32>
    %29 = arith.mulf %27, %28 : vector<128x128xf32>
    %30 = arith.addf %24, %29 : vector<128x128xf32>
    %31 = vector.extract_strided_slice %0 {offsets = [0, 5], sizes = [128, 1], strides = [1, 1]} : vector<128x8xf32> to vector<128x1xf32>
    %32 = vector.extract_strided_slice %1 {offsets = [5, 0], sizes = [1, 128], strides = [1, 1]} : vector<8x128xf32> to vector<1x128xf32>
    %33 = vector.broadcast %31 : vector<128x1xf32> to vector<128x128xf32>
    %34 = vector.broadcast %32 : vector<1x128xf32> to vector<128x128xf32>
    %35 = arith.mulf %33, %34 : vector<128x128xf32>
    %36 = arith.addf %30, %35 : vector<128x128xf32>
    %37 = vector.extract_strided_slice %0 {offsets = [0, 6], sizes = [128, 1], strides = [1, 1]} : vector<128x8xf32> to vector<128x1xf32>
    %38 = vector.extract_strided_slice %1 {offsets = [6, 0], sizes = [1, 128], strides = [1, 1]} : vector<8x128xf32> to vector<1x128xf32>
    %39 = vector.broadcast %37 : vector<128x1xf32> to vector<128x128xf32>
    %40 = vector.broadcast %38 : vector<1x128xf32> to vector<128x128xf32>
    %41 = arith.mulf %39, %40 : vector<128x128xf32>
    %42 = arith.addf %36, %41 : vector<128x128xf32>
    %43 = vector.extract_strided_slice %0 {offsets = [0, 7], sizes = [128, 1], strides = [1, 1]} : vector<128x8xf32> to vector<128x1xf32>
    %44 = vector.extract_strided_slice %1 {offsets = [7, 0], sizes = [1, 128], strides = [1, 1]} : vector<8x128xf32> to vector<1x128xf32>
    %45 = vector.broadcast %43 : vector<128x1xf32> to vector<128x128xf32>
    %46 = vector.broadcast %44 : vector<1x128xf32> to vector<128x128xf32>
    %47 = arith.mulf %45, %46 : vector<128x128xf32>
    %48 = arith.addf %42, %47 : vector<128x128xf32>
    %c0_3 = arith.constant 0 : index
    %c0_4 = arith.constant 0 : index
    %49 = vector.load %arg3[%c0_3, %c0_4] : memref<1x128xf32, #tpu.memory_space<vmem>>, vector<1x128xf32>
    %50 = vector.broadcast %49 : vector<1x128xf32> to vector<128x128xf32>
    %51 = arith.addf %48, %50 : vector<128x128xf32>
    %52 = arith.negf %51 : vector<128x128xf32>
    %53 = math.exp %52 : vector<128x128xf32>
    %cst = arith.constant 1.000000e+00 : f32
    %54 = vector.broadcast %cst : f32 to vector<128x128xf32>
    %55 = arith.addf %54, %53 : vector<128x128xf32>
    %56 = arith.divf %54, %55 : vector<128x128xf32>
    %c0_5 = arith.constant 0 : index
    %c0_6 = arith.constant 0 : index
    %57 = vector.load %arg4[%c0_5, %c0_6] : memref<128x8xf32, #tpu.memory_space<vmem>>, vector<128x8xf32>
    %cst_7 = arith.constant dense<0.000000e+00> : vector<128x8xf32>
    %58 = tpu.matmul %56, %57, %cst_7 {dimension_numbers = #tpu.dot_dimension_numbers<[1], [0], [0], [1], [0, 0, 1, 1], [], []>} : vector<128x128xf32>, vector<128x8xf32>, vector<128x8xf32> -> vector<128x8xf32>
    %c0_8 = arith.constant 0 : index
    %c0_9 = arith.constant 0 : index
    %59 = vector.load %arg5[%c0_8, %c0_9] : memref<1x8xf32, #tpu.memory_space<vmem>>, vector<1x8xf32>
    %60 = vector.broadcast %59 : vector<1x8xf32> to vector<128x8xf32>
    %61 = arith.addf %58, %60 : vector<128x8xf32>
    %c0_10 = arith.constant 0 : index
    %c0_11 = arith.constant 0 : index
    %62 = vector.load %arg6[%c0_10, %c0_11] : memref<128x8xf32, #tpu.memory_space<vmem>>, vector<128x8xf32>
    tpu.vector_store %arg6[%c0_10, %c0_11], %61 {strides = array<i32>} : memref<128x8xf32, #tpu.memory_space<vmem>>, vector<128x8xf32>,
    return
  }
  func.func @transform_0(%arg0: i32) -> (i32, i32) {
    %c0_i32 = arith.constant 0 : i32
    %c0_i32_0 = arith.constant 0 : i32
    return %arg0, %c0_i32 : i32, i32
  }
  func.func @transform_1(%arg0: i32) -> (i32, i32) {
    %c0_i32 = arith.constant 0 : i32
    %c0_i32_0 = arith.constant 0 : i32
    %c0_i32_1 = arith.constant 0 : i32
    return %c0_i32, %c0_i32_0 : i32, i32
  }
  func.func @transform_2(%arg0: i32) -> (i32, i32) {
    %c0_i32 = arith.constant 0 : i32
    %c0_i32_0 = arith.constant 0 : i32
    %c0_i32_1 = arith.constant 0 : i32
    return %c0_i32, %c0_i32_0 : i32, i32
  }
  func.func @transform_3(%arg0: i32) -> (i32, i32) {
    %c0_i32 = arith.constant 0 : i32
    %c0_i32_0 = arith.constant 0 : i32
    %c0_i32_1 = arith.constant 0 : i32
    return %c0_i32, %c0_i32_0 : i32, i32
  }
  func.func @transform_4(%arg0: i32) -> (i32, i32) {
    %c0_i32 = arith.constant 0 : i32
    %c0_i32_0 = arith.constant 0 : i32
    %c0_i32_1 = arith.constant 0 : i32
    return %c0_i32, %c0_i32_0 : i32, i32
  }
  func.func @transform_5(%arg0: i32) -> (i32, i32) {
    %c0_i32 = arith.constant 0 : i32
    %c0_i32_0 = arith.constant 0 : i32
    return %arg0, %c0_i32 : i32, i32
  }
}

module attributes {stable_mosaic.version = 11 : i64} {
  func.func @_dagma_kernel(%arg0: i32, %arg1: memref<128x8xf32, #tpu.memory_space<vmem>>, %arg2: memref<8x128xf32, #tpu.memory_space<vmem>>, %arg3: memref<1x128xf32, #tpu.memory_space<vmem>>, %arg4: memref<128x8xf32, #tpu.memory_space<vmem>>, %arg5: memref<1x8xf32, #tpu.memory_space<vmem>>, %arg6: memref<128x8xf32, #tpu.memory_space<vmem>>) attributes {dimension_semantics = [#tpu.dimension_semantics<parallel>], iteration_bounds = array<i64: 2>, scalar_prefetch = 0 : i64, scratch_operands = 0 : i64, tpu.core_type = #tpu.core_type<tc>, window_params = [{transform_indices = @transform_0, window_bounds = array<i64: 128, 8>}, {pipeline_mode = #tpu.pipeline_mode<synchronous>, transform_indices = @transform_1, window_bounds = array<i64: 8, 128>}, {pipeline_mode = #tpu.pipeline_mode<synchronous>, transform_indices = @transform_2, window_bounds = array<i64: 1, 128>}, {pipeline_mode = #tpu.pipeline_mode<synchronous>, transform_indices = @transform_3, window_bounds = array<i64: 128, 8>}, {pipeline_mode = #tpu.pipeline_mode<synchronous>, transform_indices = @transform_4, window_bounds = array<i64: 1, 8>}, {transform_indices = @transform_5, window_bounds = array<i64: 128, 8>}]} {
    %c0 = arith.constant 0 : index
    %c0_0 = arith.constant 0 : index
    %0 = vector.load %arg1[%c0, %c0_0] : memref<128x8xf32, #tpu.memory_space<vmem>>, vector<128x8xf32>
    %c0_1 = arith.constant 0 : index
    %c0_2 = arith.constant 0 : index
    %1 = vector.load %arg2[%c0_1, %c0_2] : memref<8x128xf32, #tpu.memory_space<vmem>>, vector<8x128xf32>
    %2 = vector.extract_strided_slice %0 {offsets = [0, 0], sizes = [128, 1], strides = [1, 1]} : vector<128x8xf32> to vector<128x1xf32>
    %3 = vector.extract_strided_slice %1 {offsets = [0, 0], sizes = [1, 128], strides = [1, 1]} : vector<8x128xf32> to vector<1x128xf32>
    %4 = vector.broadcast %2 : vector<128x1xf32> to vector<128x128xf32>
    %5 = vector.broadcast %3 : vector<1x128xf32> to vector<128x128xf32>
    %6 = arith.mulf %4, %5 : vector<128x128xf32>
    %7 = vector.extract_strided_slice %0 {offsets = [0, 1], sizes = [128, 1], strides = [1, 1]} : vector<128x8xf32> to vector<128x1xf32>
    %8 = vector.extract_strided_slice %1 {offsets = [1, 0], sizes = [1, 128], strides = [1, 1]} : vector<8x128xf32> to vector<1x128xf32>
    %9 = vector.broadcast %7 : vector<128x1xf32> to vector<128x128xf32>
    %10 = vector.broadcast %8 : vector<1x128xf32> to vector<128x128xf32>
    %11 = arith.mulf %9, %10 : vector<128x128xf32>
    %12 = arith.addf %6, %11 : vector<128x128xf32>
    %13 = vector.extract_strided_slice %0 {offsets = [0, 2], sizes = [128, 1], strides = [1, 1]} : vector<128x8xf32> to vector<128x1xf32>
    %14 = vector.extract_strided_slice %1 {offsets = [2, 0], sizes = [1, 128], strides = [1, 1]} : vector<8x128xf32> to vector<1x128xf32>
    %15 = vector.broadcast %13 : vector<128x1xf32> to vector<128x128xf32>
    %16 = vector.broadcast %14 : vector<1x128xf32> to vector<128x128xf32>
    %17 = arith.mulf %15, %16 : vector<128x128xf32>
    %18 = arith.addf %12, %17 : vector<128x128xf32>
    %19 = vector.extract_strided_slice %0 {offsets = [0, 3], sizes = [128, 1], strides = [1, 1]} : vector<128x8xf32> to vector<128x1xf32>
    %20 = vector.extract_strided_slice %1 {offsets = [3, 0], sizes = [1, 128], strides = [1, 1]} : vector<8x128xf32> to vector<1x128xf32>
    %21 = vector.broadcast %19 : vector<128x1xf32> to vector<128x128xf32>
    %22 = vector.broadcast %20 : vector<1x128xf32> to vector<128x128xf32>
    %23 = arith.mulf %21, %22 : vector<128x128xf32>
    %24 = arith.addf %18, %23 : vector<128x128xf32>
    %25 = vector.extract_strided_slice %0 {offsets = [0, 4], sizes = [128, 1], strides = [1, 1]} : vector<128x8xf32> to vector<128x1xf32>
    %26 = vector.extract_strided_slice %1 {offsets = [4, 0], sizes = [1, 128], strides = [1, 1]} : vector<8x128xf32> to vector<1x128xf32>
    %27 = vector.broadcast %25 : vector<128x1xf32> to vector<128x128xf32>
    %28 = vector.broadcast %26 : vector<1x128xf32> to vector<128x128xf32>
    %29 = arith.mulf %27, %28 : vector<128x128xf32>
    %30 = arith.addf %24, %29 : vector<128x128xf32>
    %31 = vector.extract_strided_slice %0 {offsets = [0, 5], sizes = [128, 1], strides = [1, 1]} : vector<128x8xf32> to vector<128x1xf32>
    %32 = vector.extract_strided_slice %1 {offsets = [5, 0], sizes = [1, 128], strides = [1, 1]} : vector<8x128xf32> to vector<1x128xf32>
    %33 = vector.broadcast %31 : vector<128x1xf32> to vector<128x128xf32>
    %34 = vector.broadcast %32 : vector<1x128xf32> to vector<128x128xf32>
    %35 = arith.mulf %33, %34 : vector<128x128xf32>
    %36 = arith.addf %30, %35 : vector<128x128xf32>
    %37 = vector.extract_strided_slice %0 {offsets = [0, 6], sizes = [128, 1], strides = [1, 1]} : vector<128x8xf32> to vector<128x1xf32>
    %38 = vector.extract_strided_slice %1 {offsets = [6, 0], sizes = [1, 128], strides = [1, 1]} : vector<8x128xf32> to vector<1x128xf32>
    %39 = vector.broadcast %37 : vector<128x1xf32> to vector<128x128xf32>
    %40 = vector.broadcast %38 : vector<1x128xf32> to vector<128x128xf32>
    %41 = arith.mulf %39, %40 : vector<128x128xf32>
    %42 = arith.addf %36, %41 : vector<128x128xf32>
    %43 = vector.extract_strided_slice %0 {offsets = [0, 7], sizes = [128, 1], strides = [1, 1]} : vector<128x8xf32> to vector<128x1xf32>
    %44 = vector.extract_strided_slice %1 {offsets = [7, 0], sizes = [1, 128], strides = [1, 1]} : vector<8x128xf32> to vector<1x128xf32>
    %45 = vector.broadcast %43 : vector<128x1xf32> to vector<128x128xf32>
    %46 = vector.broadcast %44 : vector<1x128xf32> to vector<128x128xf32>
    %47 = arith.mulf %45, %46 : vector<128x128xf32>
    %48 = arith.addf %42, %47 : vector<128x128xf32>
    %c0_3 = arith.constant 0 : index
    %c0_4 = arith.constant 0 : index
    %49 = vector.load %arg3[%c0_3, %c0_4] : memref<1x128xf32, #tpu.memory_space<vmem>>, vector<1x128xf32>
    %50 = vector.broadcast %49 : vector<1x128xf32> to vector<128x128xf32>
    %51 = arith.addf %48, %50 : vector<128x128xf32>
    %52 = arith.negf %51 : vector<128x128xf32>
    %53 = math.exp %52 : vector<128x128xf32>
    %cst = arith.constant 1.000000e+00 : f32
    %54 = vector.broadcast %cst : f32 to vector<128x128xf32>
    %55 = arith.addf %54, %53 : vector<128x128xf32>
    %56 = arith.divf %54, %55 : vector<128x128xf32>
    %c0_5 = arith.constant 0 : index
    %c0_6 = arith.constant 0 : index
    %57 = vector.load %arg4[%c0_5, %c0_6] : memref<128x8xf32, #tpu.memory_space<vmem>>, vector<128x8xf32>
    %cst_7 = arith.constant dense<0.000000e+00> : vector<128x8xf32>
    %58 = tpu.matmul %56, %57, %cst_7 {dimension_numbers = #tpu.dot_dimension_numbers<[1], [0], [0], [1], [0, 0, 1, 1], [], []>} : vector<128x128xf32>, vector<128x8xf32>, vector<128x8xf32> -> vector<128x8xf32>
    %c0_8 = arith.constant 0 : index
    %c0_9 = arith.constant 0 : index
    %59 = vector.load %arg5[%c0_8, %c0_9] : memref<1x8xf32, #tpu.memory_space<vmem>>, vector<1x8xf32>
    %60 = vector.broadcast %59 : vector<1x8xf32> to vector<128x8xf32>
    %61 = arith.addf %58, %60 : vector<128x8xf32>
    %c0_10 = arith.constant 0 : index
    %c0_11 = arith.constant 0 : index
    %62 = vector.load %arg6[%c0_10, %c0_11] : memref<128x8xf32, #tpu.memory_space<vmem>>, vector<128x8xf32>
    tpu.vector_store %arg6[%c0_10, %c0_11], %61 {strides = array<i32>} : memref<128x8xf32, #tpu.memory_space<vmem>>, vector<128x8xf32>,
    return
  }
  func.func @transform_0(%arg0: i32) -> (i32, i32) {
    %c0_i32 = arith.constant 0 : i32
    %c0_i32_0 = arith.constant 0 : i32
    return %arg0, %c0_i32 : i32, i32
  }
  func.func @transform_1(%arg0: i32) -> (i32, i32) {
    %c0_i32 = arith.constant 0 : i32
    %c0_i32_0 = arith.constant 0 : i32
    %c0_i32_1 = arith.constant 0 : i32
    return %c0_i32, %c0_i32_0 : i32, i32
  }
  func.func @transform_2(%arg0: i32) -> (i32, i32) {
    %c0_i32 = arith.constant 0 : i32
    %c0_i32_0 = arith.constant 0 : i32
    %c0_i32_1 = arith.constant 0 : i32
    return %c0_i32, %c0_i32_0 : i32, i32
  }
  func.func @transform_3(%arg0: i32) -> (i32, i32) {
    %c0_i32 = arith.constant 0 : i32
    %c0_i32_0 = arith.constant 0 : i32
    %c0_i32_1 = arith.constant 0 : i32
    return %c0_i32, %c0_i32_0 : i32, i32
  }
  func.func @transform_4(%arg0: i32) -> (i32, i32) {
    %c0_i32 = arith.constant 0 : i32
    %c0_i32_0 = arith.constant 0 : i32
    %c0_i32_1 = arith.constant 0 : i32
    return %c0_i32, %c0_i32_0 : i32, i32
  }
  func.func @transform_5(%arg0: i32) -> (i32, i32) {
    %c0_i32 = arith.constant 0 : i32
    %c0_i32_0 = arith.constant 0 : i32
    return %arg0, %c0_i32 : i32, i32
  }
}

</mosaic_0001>

<bundles_post_ra>
// kernel: tpu_custom_call.1
= control target key start
LH: loop header
LB: loop body
LE: loop exit
PB: predicated region body
PF: predicated region fallthrough
CT: control target
= control target key end

     0   :  { %s1748_s18 = smov 0   ;;  %s2480_s0 = inlined_call_operand.vmem [shape: f32[256,8], index: 0, kind: input, shape index: {}]   ;;  %s2481_s1 = inlined_call_operand.vmem [shape: f32[8,128], index: 1, kind: input, shape index: {}]   ;;  %s2482_s2 = inlined_call_operand.vmem [shape: f32[1,128], index: 2, kind: input, shape index: {}]   ;;  %s2483_s3 = inlined_call_operand.vmem [shape: f32[128,8], index: 3, kind: input, shape index: {}]   ;;  %s2484_s4 = inlined_call_operand.vmem [shape: f32[1,8], index: 4, kind: input, shape index: {}]   ;;  %s2485_s5 = inlined_call_operand.vmem [shape: f32[256,8], index: 5, kind: output, shape index: {}]  }
   0x1 LB: > { %s1405_s19 = sadd.s32 4294967295, %s1708_s18   ;;  %p1409_p0 = scmp.ge.s32.totalorder %s1708_s18, 1  ;;  %s1708_s18 = sphi %s1748_s18, %s15_s18  }
   0x2   : > { %p188_p1 = scmp.lt.s32.totalorder %s1708_s18, 3 }
   0x4   : > { %p189_p2 = pnand %p1409_p0, %p188_p1 }
   0x5   : > { %s1410_s20 = sshll.u32 (!%p189_p2), %s1405_s19, 4  ;;  %v1710_v0 = vmov (!%p189_p2), 0   ;;  %v1711_v17 = vmov (!%p189_p2), 1   ;;  %v1712_v18 = vmov (!%p189_p2), 2   ;;  %v1713_v19 = vmov (!%p189_p2), 3   ;;  %v1894_v27 = vld [vmem:[%s2481_s1] sm:$0xff] (!%p189_p2) }
   0x6   : > { %192 = sbr.rel (%p189_p2) target bundleno = 737 (0x2e1), region = 40  ;;  %1587 = vset.pattern.permute.xlu1 (!%p189_p2), %v1710_v0  ;;  %1586 = vset.pattern.permute.xlu0 (!%p189_p2), %v1710_v0  ;;  %p217_p3 = scmp.lt.s32.totalorder (!%p189_p2), %s1410_s20, 31  ;;  %v1714_v20 = vmov (!%p189_p2), 4   ;;  %v1715_v21 = vmov (!%p189_p2), 5   ;;  %v325_v22 = vlaneseq (!%p189_p2)  ;;  %v2486_v39 = vmov (!%p189_p2), 6  }
   0x7   : > { %vm1332_vm0 = vcmask (!%p189_p2), 64512  }
   0x8   : > { %v1884_v23 = vshrl.u32 (!%p189_p2), %v325_v22, 7 }
   0xa   : > { %v327_v26 = vsub.s32 (!%p189_p2), 0, %v1884_v23  ;;  %v411_v49 = vsub.s32 (!%p189_p2), 1, %v1884_v23 }
   0xc   : > { %v1901_v30 = vrot.slane (!%p189_p2), %v1894_v27, %v327_v26  ;;  %v1946_v52 = vrot.slane (!%p189_p2), %v1894_v27, %v411_v49 }
   0xd   : > { %s2489_s20 = smov (!%p217_p3, %s1410_s20), 31 }
   0xe   : > { %s1411_s21 = sshll.u32 %s2489_s20, 3 }
   0xf   : > { %s1764_s24 = scalar_lea.vmem %s2480_s0, %s1411_s21  ;;  %s2443_s19 = scalar_lea.vmem %s2485_s5, %s1411_s21 }
  0x10   : > { %v1767_v1 = vld [vmem:[%s1764_s24 + $0x10] sm:$0xff]  ;;  %v1770_v2 = vld [vmem:[%s1764_s24] sm:$0xff]  ;;  %v1775_v3 = vld [vmem:[%s1764_s24 + $0x18] sm:$0xff] }
  0x11   : > { %257 = vperm.xlu1 %1587, %v1767_v1   ;;  %247 = vperm.xlu0 %1586, %v1770_v2   ;;  %v1778_v4 = vld [vmem:[%s1764_s24 + $0x8] sm:$0xff]  ;;  %v1786_v6 = vld [vmem:[%s1764_s24 + $0x20] sm:$0xff]  ;;  %v1791_v7 = vld [vmem:[%s1764_s24 + $0x38] sm:$0xff] }
  0x12   : > { %v1783_v5 = vld [vmem:[%s1764_s24 + $0x28] sm:$0xff]  ;;  %v1794_v8 = vld [vmem:[%s1764_s24 + $0x30] sm:$0xff]  ;;  %v1802_v10 = vld [vmem:[%s1764_s24 + $0x40] sm:$0xff] }
  0x13   : > { %v1799_v9 = vld [vmem:[%s1764_s24 + $0x48] sm:$0xff]  ;;  %v1807_v11 = vld [vmem:[%s1764_s24 + $0x58] sm:$0xff]  ;;  %v1810_v12 = vld [vmem:[%s1764_s24 + $0x50] sm:$0xff] }
  0x14   : > { %v1815_v13 = vld [vmem:[%s1764_s24 + $0x68] sm:$0xff]  ;;  %v1818_v14 = vld [vmem:[%s1764_s24 + $0x60] sm:$0xff]  ;;  %v1823_v15 = vld [vmem:[%s1764_s24 + $0x78] sm:$0xff] }
  0x15   : > { %262 = vperm.xlu1 %1587, %v1775_v3   ;;  %252 = vperm.xlu0 %1586, %v1778_v4   ;;  %v1826_v16 = vld [vmem:[%s1764_s24 + $0x70] sm:$0xff] }
  0x19   : > { %272 = vperm.xlu1 %1587, %v1783_v5   ;;  %267 = vperm.xlu0 %1586, %v1786_v6  }
  0x1d   : > { %282 = vperm.xlu1 %1587, %v1791_v7   ;;  %277 = vperm.xlu0 %1586, %v1794_v8  }
  0x21   : > { %292 = vperm.xlu1 %1587, %v1799_v9   ;;  %287 = vperm.xlu0 %1586, %v1802_v10  }
  0x25   : > { %302 = vperm.xlu1 %1587, %v1807_v11   ;;  %297 = vperm.xlu0 %1586, %v1810_v12  }
  0x29   : > { %312 = vperm.xlu1 %1587, %v1815_v13   ;;  %307 = vperm.xlu0 %1586, %v1818_v14  }
  0x2d   : > { %322 = vperm.xlu1 %1587, %v1823_v15   ;;  %317 = vperm.xlu0 %1586, %v1826_v16  }
  0x31   : > { %1589 = vset.pattern.permute.xlu1 %v1711_v17  ;;  %1588 = vset.pattern.permute.xlu0 %v1711_v17 }
  0x32   : > { %350 = vperm.xlu1 %1589, %v1778_v4   ;;  %346 = vperm.xlu0 %1588, %v1770_v2  }
  0x36   : > { %354 = vperm.xlu1 %1589, %v1767_v1   ;;  %358 = vperm.xlu0 %1588, %v1775_v3  }
  0x3a   : > { %362 = vperm.xlu1 %1589, %v1786_v6   ;;  %366 = vperm.xlu0 %1588, %v1783_v5  }
  0x3e   : > { %370 = vperm.xlu1 %1589, %v1794_v8   ;;  %374 = vperm.xlu0 %1588, %v1791_v7  }
  0x42   : > { %378 = vperm.xlu1 %1589, %v1802_v10   ;;  %382 = vperm.xlu0 %1588, %v1799_v9  }
  0x46   : > { %386 = vperm.xlu1 %1589, %v1810_v12   ;;  %390 = vperm.xlu0 %1588, %v1807_v11  }
  0x4a   : > { %394 = vperm.xlu1 %1589, %v1818_v14   ;;  %398 = vperm.xlu0 %1588, %v1815_v13  }
  0x4e   : > { %402 = vperm.xlu1 %1589, %v1826_v16   ;;  %406 = vperm.xlu0 %1588, %v1823_v15  }
  0x52   : > { %1590 = vset.pattern.permute.xlu1 %v1712_v18  ;;  %1591 = vset.pattern.permute.xlu0 %v1712_v18 }
  0x53   : > { %446 = vperm.xlu1 %1590, %v1770_v2   ;;  %450 = vperm.xlu0 %1591, %v1778_v4  }
  0x57   : > { %454 = vperm.xlu1 %1590, %v1767_v1   ;;  %462 = vperm.xlu0 %1591, %v1786_v6  }
  0x5b   : > { %458 = vperm.xlu1 %1590, %v1775_v3   ;;  %470 = vperm.xlu0 %1591, %v1794_v8  }
  0x5f   : > { %466 = vperm.xlu1 %1590, %v1783_v5   ;;  %478 = vperm.xlu0 %1591, %v1802_v10  }
  0x63   : > { %474 = vperm.xlu1 %1590, %v1791_v7   ;;  %486 = vperm.xlu0 %1591, %v1810_v12  }
  0x67   : > { %482 = vperm.xlu1 %1590, %v1799_v9   ;;  %494 = vperm.xlu0 %1591, %v1818_v14  }
  0x6b   : > { %490 = vperm.xlu1 %1590, %v1807_v11   ;;  %498 = vperm.xlu0 %1591, %v1815_v13  }
  0x6f   : > { %1592 = vset.pattern.permute.xlu1 %v1713_v19  ;;  %1600 = vset.pattern.permute.xlu0 %v1713_v19 }
  0x70   : > { %546 = vperm.xlu1 %1592, %v1770_v2   ;;  %578 = vperm.xlu0 %1600, %v1802_v10  }
  0x74   : > { %550 = vperm.xlu1 %1592, %v1778_v4   ;;  %586 = vperm.xlu0 %1600, %v1810_v12  }
  0x78   : > { %582 = vperm.xlu1 %1592, %v1799_v9   ;;  %558 = vperm.xlu0 %1600, %v1775_v3  }
  0x7c   : > { %1593 = vset.pattern.permute.xlu1 %v1714_v20  ;;  %594 = vperm.xlu0 %1600, %v1818_v14  }
  0x7d   : > { %678 = vperm.xlu1 %1593, %v1802_v10  }
  0x80   : > { %598 = vperm.xlu0 %1600, %v1815_v13  }
  0x81   : > { %650 = vperm.xlu1 %1593, %v1778_v4  }
  0x84   : > { %570 = vperm.xlu0 %1600, %v1794_v8  }
  0x85   : > { %1594 = vset.pattern.permute.xlu1 %v1713_v19 }
  0x86   : > { %554 = vperm.xlu1 %1594, %v1767_v1  }
  0x88   : > { %574 = vperm.xlu0 %1600, %v1791_v7  }
  0x8a   : > { %1595 = vset.pattern.permute.xlu1 %v1715_v21 }
  0x8b   : > { %746 = vperm.xlu1 %1595, %v1770_v2  }
  0x8c   : > { %1618 = vset.pattern.permute.xlu0 %v1714_v20 }
  0x8d   : > { %646 = vperm.xlu0 %1618, %v1770_v2  }
  0x8f   : > { %778 = vperm.xlu1 %1595, %v1802_v10  }
  0x90   : > { %v258_v24 = vpop.permute.xlu1 %257  ;;  %v1886_v25 = vpop.permute.xlu0 %247 }
  0x91   : > { %682 = vperm.xlu0 %1618, %v1799_v9   ;;  %v331_v55 = vmul.f32 %v1901_v30, %v258_v24 }
  0x93   : > { %1596 = vset.pattern.permute.xlu1 %v1713_v19 }
  0x94   : > { %v263_v28 = vpop.permute.xlu1 %262  ;;  %590 = vperm.xlu1 %1596, %v1807_v11   ;;  %v1897_v29 = vpop.permute.xlu0 %252 }
  0x95   : > { %686 = vperm.xlu0 %1618, %v1810_v12   ;;  %v332_v56 = vmul.f32 %v1901_v30, %v263_v28 }
  0x98   : > { %v273_v31 = vpop.permute.xlu1 %272  ;;  %1597 = vset.pattern.permute.xlu1 %v1715_v21  ;;  %v268_v32 = vpop.permute.xlu0 %267 }
  0x99   : > { %782 = vperm.xlu1 %1597, %v1799_v9   ;;  %662 = vperm.xlu0 %1618, %v1786_v6   ;;  %v333_v33 = vmul.f32 %v1901_v30, %v268_v32  ;;  %v334_v63 = vmul.f32 %v1901_v30, %v273_v31 }
  0x9c   : > { %v283_v34 = vpop.permute.xlu1 %282  ;;  %v278_v35 = vpop.permute.xlu0 %277 }
  0x9d   : > { %1598 = vset.pattern.permute.xlu1 %v1714_v20  ;;  %698 = vperm.xlu0 %1618, %v1815_v13   ;;  %v335_v36 = vmul.f32 %v1901_v30, %v278_v35  ;;  %v336_v32 = vmul.f32 %v1901_v30, %v283_v34 }
  0x9e   : > { %654 = vperm.xlu1 %1598, %v1767_v1  }
  0xa0   : > { %v1911_v37 = vpop.permute.xlu1 %292  ;;  %v1913_v38 = vpop.permute.xlu0 %287 }
  0xa1   : > { %670 = vperm.xlu0 %1618, %v1794_v8  }
  0xa2   : > { %1599 = vset.pattern.permute.xlu1 %v2486_v39 }
  0xa3   : > { %846 = vperm.xlu1 %1599, %v1770_v2  }
  0xa4   : > { %v303_v40 = vpop.permute.xlu1 %302  ;;  %v298_v41 = vpop.permute.xlu0 %297 }
  0xa5   : > { %1622 = vset.pattern.permute.xlu0 %v1715_v21  ;;  %v1920_v42 = vmul.f32 %v1901_v30, %v298_v41 }
  0xa6   : > { %750 = vperm.xlu0 %1622, %v1778_v4  }
  0xa7   : > { %878 = vperm.xlu1 %1599, %v1802_v10  }
  0xa8   : > { %v1924_v43 = vpop.permute.xlu1 %312  ;;  %v308_v44 = vpop.permute.xlu0 %307 }
  0xa9   : > { %v1927_v45 = vmul.f32 %v1901_v30, %v308_v44 }
  0xaa   : > { %794 = vperm.xlu0 %1622, %v1818_v14  }
  0xab   : > { %1601 = vset.pattern.permute.xlu1 %v1714_v20 }
  0xac   : > { %v1931_v46 = vpop.permute.xlu1 %322  ;;  %658 = vperm.xlu1 %1601, %v1775_v3   ;;  %v318_v47 = vpop.permute.xlu0 %317 }
  0xad   : > { %v1935_v48 = vmul.f32 %v1901_v30, %v318_v47 }
  0xae   : > { %798 = vperm.xlu0 %1622, %v1815_v13  }
  0xb0   : > { %690 = vperm.xlu1 %1601, %v1807_v11  }
  0xb1   : > { %v1940_v50 = vpop.permute.xlu1 %350  ;;  %v1942_v51 = vpop.permute.xlu0 %346 }
  0xb2   : > { %770 = vperm.xlu0 %1622, %v1794_v8  }
  0xb4   : > { %1602 = vset.pattern.permute.xlu1 %v2486_v39 }
  0xb5   : > { %v355_v53 = vpop.permute.xlu1 %354  ;;  %882 = vperm.xlu1 %1602, %v1799_v9   ;;  %v359_v54 = vpop.permute.xlu0 %358 }
  0xb6   : > { %v415_v57 = vmul.f32 %v1946_v52, %v355_v53  ;;  %v416_v58 = vmul.f32 %v1946_v52, %v359_v54  ;;  %1627 = vset.pattern.permute.xlu0 %v2486_v39  ;;  %v340_v53 = vmul.f32 %v1901_v30, %v303_v40  ;;  %v342_v40 = vmul.f32 %v1901_v30, %v1924_v43 }
  0xb7   : > { %850 = vperm.xlu0 %1627, %v1778_v4   ;;  %v344_v43 = vmul.f32 %v1901_v30, %v1931_v46  ;;  %v1164_v46 = vld [vmem:[%s2483_s3] sm:$0xff] }
  0xb8   : > { %v1956_v59 = vadd.f32 %v415_v57, %v331_v55  ;;  %v1958_v60 = vadd.f32 %v416_v58, %v332_v56 }
  0xb9   : > { %v363_v61 = vpop.permute.xlu1 %362  ;;  %1603 = vset.pattern.permute.xlu1 %v1713_v19  ;;  %v367_v62 = vpop.permute.xlu0 %366 }
  0xba   : > { %v417_v0 = vmul.f32 %v1946_v52, %v363_v61  ;;  %v418_v17 = vmul.f32 %v1946_v52, %v367_v62  ;;  %562 = vperm.xlu1 %1603, %v1786_v6  }
  0xbb   : > { %886 = vperm.xlu0 %1627, %v1810_v12  }
  0xbc   : > { %v1966_v22 = vadd.f32 %v417_v0, %v333_v33  ;;  %v1968_v24 = vadd.f32 %v418_v17, %v334_v63 }
  0xbd   : > { %v371_v26 = vpop.permute.xlu1 %370  ;;  %v375_v28 = vpop.permute.xlu0 %374 }
  0xbe   : > { %v419_v35 = vmul.f32 %v1946_v52, %v371_v26  ;;  %v420_v31 = vmul.f32 %v1946_v52, %v375_v28  ;;  %1604 = vset.pattern.permute.xlu1 %v1715_v21 }
  0xbf   : > { %754 = vperm.xlu1 %1604, %v1767_v1   ;;  %894 = vperm.xlu0 %1627, %v1818_v14  }
  0xc0   : > { %v1976_v41 = vadd.f32 %v419_v35, %v335_v36  ;;  %v1978_v33 = vadd.f32 %v420_v31, %v336_v32  ;;  %v1717_v36 = vmov 7   ;;  %v511_v32 = vsub.s32 2, %v1884_v23  ;;  %v1165_v35 = vld [vmem:[%s2483_s3 + $0x8] sm:$0xff] }
  0xc1   : > { %v1980_v44 = vpop.permute.xlu1 %378  ;;  %v1982_v47 = vpop.permute.xlu0 %382 }
  0xc3   : > { %786 = vperm.xlu1 %1604, %v1810_v12   ;;  %866 = vperm.xlu0 %1627, %v1783_v5  }
  0xc5   : > { %v387_v34 = vpop.permute.xlu1 %386  ;;  %v391_v49 = vpop.permute.xlu0 %390 }
  0xc6   : > { %v423_v54 = vmul.f32 %v1946_v52, %v387_v34  ;;  %v424_v55 = vmul.f32 %v1946_v52, %v391_v49  ;;  %v1522_v34 = vpack.c.bf16 %v1165_v35, %v1164_v46  ;;  %v1166_v49 = vld [vmem:[%s2483_s3 + $0x10] sm:$0xff] }
  0xc7   : > { %1605 = vset.pattern.permute.xlu1 %v1717_v36  ;;  %870 = vperm.xlu0 %1627, %v1794_v8  }
  0xc8   : > { %v1992_v56 = vadd.f32 %v423_v54, %v1920_v42  ;;  %v1994_v57 = vadd.f32 %v424_v55, %v340_v53  ;;  %978 = vperm.xlu1 %1605, %v1802_v10   ;;  %1523 = vmatprep.subr.bf16.mxu0 %v1522_v34  ;;  %v1167_v53 = vld [vmem:[%s2483_s3 + $0x18] sm:$0xff] }
  0xc9   : > { %v395_v58 = vpop.permute.xlu1 %394  ;;  %v399_v61 = vpop.permute.xlu0 %398  ;;  %1525 = vmatpush3.bf16.msra.mxu0 %v1522_v34  ;;  %1554 = vmatprep.subr.bf16.mxu1 %v1522_v34 }
  0xca   : > { %v425_v62 = vmul.f32 %v1946_v52, %v395_v58  ;;  %v426_v63 = vmul.f32 %v1946_v52, %v399_v61  ;;  %1562 = vmatpush3.bf16.msra.mxu1 %v1522_v34 }
  0xcb   : > { %906 = vperm.xlu0 %1627, %v1823_v15  }
  0xcc   : > { %v2003_v8 = vadd.f32 %v425_v62, %v1927_v45  ;;  %v2005_v42 = vadd.f32 %v426_v63, %v342_v40  ;;  %1606 = vset.pattern.permute.xlu1 %v1713_v19  ;;  %v1168_v40 = vld [vmem:[%s2483_s3 + $0x20] sm:$0xff]  ;;  %v1169_v62 = vld [vmem:[%s2483_s3 + $0x28] sm:$0xff] }
  0xcd   : > { %v403_v0 = vpop.permute.xlu1 %402  ;;  %566 = vperm.xlu1 %1606, %v1783_v5   ;;  %v407_v10 = vpop.permute.xlu0 %406 }
  0xce   : > { %v427_v17 = vmul.f32 %v1946_v52, %v403_v0  ;;  %v428_v26 = vmul.f32 %v1946_v52, %v407_v10  ;;  %v1530_v10 = vpack.c.bf16 %v1169_v62, %v1168_v40 }
  0xcf   : > { %1633 = vset.pattern.permute.xlu0 %v1717_v36 }
  0xd0   : > { %v2015_v45 = vadd.f32 %v427_v17, %v1935_v48  ;;  %v2017_v28 = vadd.f32 %v428_v26, %v344_v43  ;;  %946 = vperm.xlu0 %1633, %v1770_v2   ;;  %v2035_v2 = vrot.slane %v1894_v27, %v511_v32  ;;  %v421_v43 = vmul.f32 %v1946_v52, %v1980_v44  ;;  %v1170_v32 = vld [vmem:[%s2483_s3 + $0x30] sm:$0xff] }
  0xd1   : > { %1607 = vset.pattern.permute.xlu1 %v1715_v21 }
  0xd2   : > { %758 = vperm.xlu1 %1607, %v1775_v3   ;;  %v2029_v48 = vpop.permute.xlu1 %446  ;;  %v2031_v31 = vpop.permute.xlu0 %450 }
  0xd4   : > { %950 = vperm.xlu0 %1633, %v1778_v4   ;;  %v1526_v4 = vpack.c.bf16 %v1167_v53, %v1166_v49  ;;  %v1172_v49 = vld [vmem:[%s2483_s3 + $0x40] sm:$0xff]  ;;  %v1173_v53 = vld [vmem:[%s2483_s3 + $0x48] sm:$0xff] }
  0xd6   : > { %790 = vperm.xlu1 %1607, %v1807_v11   ;;  %v2044_v54 = vpop.permute.xlu1 %454  ;;  %v463_v55 = vpop.permute.xlu0 %462  ;;  %1527 = vmatprep.subr.bf16.mxu0 %v1526_v4 }
  0xd7   : > { %v517_v58 = vmul.f32 %v2035_v2, %v463_v55  ;;  %1529 = vmatpush3.bf16.msra.mxu0 %v1526_v4  ;;  %1555 = vmatprep.subr.bf16.mxu1 %v1526_v4 }
  0xd8   : > { %994 = vperm.xlu0 %1633, %v1818_v14   ;;  %1563 = vmatpush3.bf16.msra.mxu1 %v1526_v4 }
  0xd9   : > { %v2049_v61 = vadd.f32 %v517_v58, %v1966_v22  ;;  %v337_v22 = vmul.f32 %v1901_v30, %v1913_v38  ;;  %1531 = vmatprep.subr.bf16.mxu0 %v1530_v10  ;;  %v1171_v38 = vld [vmem:[%s2483_s3 + $0x38] sm:$0xff]  ;;  %1556 = vmatprep.subr.bf16.mxu1 %v1530_v10  ;;  %v1538_v58 = vpack.c.bf16 %v1173_v53, %v1172_v49 }
  0xda   : > { %1608 = vset.pattern.permute.xlu1 %v1717_v36  ;;  %v2058_v63 = vpop.permute.xlu1 %458  ;;  %v471_v0 = vpop.permute.xlu0 %470 }
  0xdb   : > { %v519_v17 = vmul.f32 %v2035_v2, %v471_v0  ;;  %982 = vperm.xlu1 %1608, %v1799_v9   ;;  %1533 = vmatpush3.bf16.msra.mxu0 %v1530_v10  ;;  %v1534_v9 = vpack.c.bf16 %v1171_v38, %v1170_v32  ;;  %v437_v35 = vadd.f32 %v421_v43, %v337_v22  ;;  %v1174_v0 = vld [vmem:[%s2483_s3 + $0x50] sm:$0xff]  ;;  %v1176_v38 = vld [vmem:[%s2483_s3 + $0x60] sm:$0xff] }
  0xdc   : > { %966 = vperm.xlu0 %1633, %v1783_v5   ;;  %1564 = vmatpush3.bf16.msra.mxu1 %v1530_v10  ;;  %v1175_v10 = vld [vmem:[%s2483_s3 + $0x58] sm:$0xff] }
  0xdd   : > { %v2068_v26 = vadd.f32 %v519_v17, %v1976_v41  ;;  %1535 = vmatprep.subr.bf16.mxu0 %v1534_v9  ;;  %1557 = vmatprep.subr.bf16.mxu1 %v1534_v9  ;;  %v1542_v17 = vpack.c.bf16 %v1175_v10, %v1174_v0 }
  0xde   : > { %v2076_v44 = vpop.permute.xlu1 %466  ;;  %v479_v46 = vpop.permute.xlu0 %478 }
  0xdf   : > { %v521_v34 = vmul.f32 %v2035_v2, %v479_v46  ;;  %1609 = vset.pattern.permute.xlu1 %v1712_v18  ;;  %1537 = vmatpush3.bf16.msra.mxu0 %v1534_v9  ;;  %v1177_v46 = vld [vmem:[%s2483_s3 + $0x68] sm:$0xff] }
  0xe0   : > { %502 = vperm.xlu1 %1609, %v1826_v16   ;;  %1002 = vperm.xlu0 %1633, %v1826_v16  }
  0xe1   : > { %v537_v41 = vadd.f32 %v521_v34, %v437_v35  ;;  %1565 = vmatpush3.bf16.msra.mxu1 %v1534_v9  ;;  %1539 = vmatprep.subr.bf16.mxu0 %v1538_v58  ;;  %v1546_v34 = vpack.c.bf16 %v1177_v46, %v1176_v38 }
  0xe2   : > { %v2088_v55 = vpop.permute.xlu1 %474  ;;  %v487_v4 = vpop.permute.xlu0 %486  ;;  %1558 = vmatprep.subr.bf16.mxu1 %v1538_v58 }
  0xe3   : > { %v523_v40 = vmul.f32 %v2035_v2, %v487_v4  ;;  %1541 = vmatpush3.bf16.msra.mxu0 %v1538_v58  ;;  %v1178_v4 = vld [vmem:[%s2483_s3 + $0x70] sm:$0xff] }
  0xe4   : > { %1610 = vset.pattern.permute.xlu1 %v1714_v20  ;;  %1543 = vmatprep.subr.bf16.mxu0 %v1542_v17 }
  0xe5   : > { %v539_v62 = vadd.f32 %v523_v40, %v1992_v56  ;;  %694 = vperm.xlu1 %1610, %v1818_v14   ;;  %1566 = vmatpush3.bf16.msra.mxu1 %v1538_v58  ;;  %v611_v56 = vsub.s32 3, %v1884_v23  ;;  %v1179_v58 = vld [vmem:[%s2483_s3 + $0x78] sm:$0xff] }
  0xe6   : > { %v2100_v22 = vpop.permute.xlu1 %482  ;;  %v495_v43 = vpop.permute.xlu0 %494  ;;  %1559 = vmatprep.subr.bf16.mxu1 %v1542_v17  ;;  %v1550_v40 = vpack.c.bf16 %v1179_v58, %v1178_v4 }
  0xe7   : > { %v525_v32 = vmul.f32 %v2035_v2, %v495_v43  ;;  %1545 = vmatpush3.bf16.msra.mxu0 %v1542_v17 }
  0xe8   : > { %1547 = vmatprep.subr.bf16.mxu0 %v1546_v34 }
  0xe9   : > { %v541_v14 = vadd.f32 %v525_v32, %v2003_v8  ;;  %1611 = vset.pattern.permute.xlu1 %v2486_v39  ;;  %1567 = vmatpush3.bf16.msra.mxu1 %v1542_v17  ;;  %v2117_v8 = vrot.slane %v1894_v27, %v611_v56  ;;  %v516_v32 = vmul.f32 %v2035_v2, %v2058_v63 }
  0xea   : > { %854 = vperm.xlu1 %1611, %v1767_v1   ;;  %v2113_v9 = vpop.permute.xlu1 %490  ;;  %v499_v35 = vpop.permute.xlu0 %498  ;;  %1560 = vmatprep.subr.bf16.mxu1 %v1546_v34 }
  0xeb   : > { %v526_v49 = vmul.f32 %v2035_v2, %v499_v35  ;;  %1549 = vmatpush3.bf16.msra.mxu0 %v1546_v34 }
  0xec   : > { %1551 = vmatprep.subr.bf16.mxu0 %v1550_v40 }
  0xed   : > { %v542_v53 = vadd.f32 %v526_v49, %v2005_v42  ;;  %1568 = vmatpush3.bf16.msra.mxu1 %v1546_v34 }
  0xee   : > { %1612 = vset.pattern.permute.xlu1 %v1712_v18  ;;  %1561 = vmatprep.subr.bf16.mxu1 %v1550_v40 }
  0xef   : > { %506 = vperm.xlu1 %1612, %v1823_v15   ;;  %v2128_v0 = vpop.permute.xlu1 %546  ;;  %v579_v10 = vpop.permute.xlu0 %578  ;;  %1553 = vmatpush3.bf16.msra.mxu0 %v1550_v40 }
  0xf0   : > { %v621_v42 = vmul.f32 %v2117_v8, %v579_v10 }
  0xf1   : > { %1569 = vmatpush3.bf16.msra.mxu1 %v1550_v40 }
  0xf2   : > { %v2131_v43 = vadd.f32 %v621_v42, %v537_v41  ;;  %v532_v41 = vadd.f32 %v516_v32, %v1958_v60  ;;  %v515_v42 = vmul.f32 %v2035_v2, %v2044_v54 }
  0xf3   : > { %1613 = vset.pattern.permute.xlu1 %v1714_v20  ;;  %v2134_v17 = vpop.permute.xlu1 %550  ;;  %v587_v18 = vpop.permute.xlu0 %586 }
  0xf4   : > { %v623_v56 = vmul.f32 %v2117_v8, %v587_v18  ;;  %666 = vperm.xlu1 %1613, %v1783_v5  }
  0xf6   : > { %v639_v38 = vadd.f32 %v623_v56, %v539_v62  ;;  %v520_v56 = vmul.f32 %v2035_v2, %v2088_v55  ;;  %v422_v55 = vmul.f32 %v1946_v52, %v1982_v47 }
  0xf7   : > { %v583_v46 = vpop.permute.xlu1 %582  ;;  %v559_v35 = vpop.permute.xlu0 %558 }
  0xf8   : > { %v616_v34 = vmul.f32 %v2117_v8, %v559_v35  ;;  %1614 = vset.pattern.permute.xlu1 %v2486_v39  ;;  %v622_v47 = vmul.f32 %v2117_v8, %v583_v46 }
  0xf9   : > { %858 = vperm.xlu1 %1614, %v1775_v3  }
  0xfa   : > { %v2144_v49 = vadd.f32 %v616_v34, %v532_v41  ;;  %v531_v41 = vadd.f32 %v515_v42, %v1956_v59  ;;  %v522_v42 = vmul.f32 %v2035_v2, %v2100_v22 }
  0xfb   : > { %v595_v4 = vpop.permute.xlu0 %594 }
  0xfc   : > { %v625_v63 = vmul.f32 %v2117_v8, %v595_v4  ;;  %v2147_v58 = vpop.permute.xlu1 %678 }
  0xfd   : > { %890 = vperm.xlu1 %1614, %v1807_v11  }
  0xfe   : > { %v2150_v62 = vadd.f32 %v625_v63, %v541_v14 }
  0xff   : > { %v599_v40 = vpop.permute.xlu0 %598 }
 0x100   : > { %v626_v60 = vmul.f32 %v2117_v8, %v599_v40  ;;  %v2153_v10 = vpop.permute.xlu1 %650 }
 0x101   : > { %1615 = vset.pattern.permute.xlu1 %v1713_v19 }
 0x102   : > { %v642_v18 = vadd.f32 %v626_v60, %v542_v53  ;;  %602 = vperm.xlu1 %1615, %v1826_v16   ;;  %v536_v53 = vadd.f32 %v520_v56, %v1978_v33 }
 0x103   : > { %v571_v32 = vpop.permute.xlu0 %570 }
 0x104   : > { %v619_v14 = vmul.f32 %v2117_v8, %v571_v32  ;;  %v711_v32 = vsub.s32 4, %v1884_v23 }
 0x105   : > { %v555_v35 = vpop.permute.xlu1 %554 }
 0x106   : > { %v635_v34 = vadd.f32 %v619_v14, %v2068_v26  ;;  %v615_v4 = vmul.f32 %v2117_v8, %v555_v35  ;;  %1616 = vset.pattern.permute.xlu1 %v1715_v21  ;;  %v338_v26 = vmul.f32 %v1901_v30, %v1911_v37  ;;  %v524_v37 = vmul.f32 %v2035_v2, %v2113_v9 }
 0x107   : > { %762 = vperm.xlu1 %1616, %v1786_v6   ;;  %v575_v54 = vpop.permute.xlu0 %574 }
 0x108   : > { %v631_v63 = vadd.f32 %v615_v4, %v531_v41  ;;  %v620_v40 = vmul.f32 %v2117_v8, %v575_v54  ;;  %v438_v56 = vadd.f32 %v422_v55, %v338_v26  ;;  %v2188_v41 = vrot.slane %v1894_v27, %v711_v32 }
 0x109   : > { %v540_v46 = vadd.f32 %v524_v37, %v1994_v57 }
 0x10a   : > { %v2171_v60 = vadd.f32 %v620_v40, %v536_v53  ;;  %v2173_v59 = vpop.permute.xlu1 %746  ;;  %v538_v35 = vadd.f32 %v522_v42, %v438_v56 }
 0x10b   : > { %1617 = vset.pattern.permute.xlu1 %v1717_v36 }
 0x10c   : > { %954 = vperm.xlu1 %1617, %v1767_v1   ;;  %v2182_v33 = vpop.permute.xlu0 %646  ;;  %v638_v4 = vadd.f32 %v622_v47, %v538_v35 }
 0x10e   : > { %v2185_v14 = vpop.permute.xlu1 %778 }
 0x110   : > { %986 = vperm.xlu1 %1617, %v1810_v12   ;;  %v683_v22 = vpop.permute.xlu0 %682 }
 0x111   : > { %v722_v1 = vmul.f32 %v2188_v41, %v683_v22 }
 0x113   : > { %v2194_v54 = vadd.f32 %v722_v1, %v638_v4  ;;  %v591_v53 = vpop.permute.xlu1 %590 }
 0x114   : > { %v624_v40 = vmul.f32 %v2117_v8, %v591_v53  ;;  %1619 = vset.pattern.permute.xlu1 %v1713_v19  ;;  %v687_v55 = vpop.permute.xlu0 %686 }
 0x115   : > { %v723_v26 = vmul.f32 %v2188_v41, %v687_v55  ;;  %606 = vperm.xlu1 %1619, %v1823_v15  }
 0x116   : > { %v640_v9 = vadd.f32 %v624_v40, %v540_v46  ;;  %v811_v46 = vsub.s32 5, %v1884_v23 }
 0x117   : > { %v2201_v12 = vadd.f32 %v723_v26, %v639_v38 }
 0x118   : > { %v2203_v42 = vpop.permute.xlu1 %782  ;;  %v663_v32 = vpop.permute.xlu0 %662 }
 0x119   : > { %1620 = vset.pattern.permute.xlu1 %v1715_v21 }
 0x11a   : > { %766 = vperm.xlu1 %1620, %v1783_v5  }
 0x11c   : > { %v699_v57 = vpop.permute.xlu0 %698 }
 0x11d   : > { %v726_v56 = vmul.f32 %v2188_v41, %v699_v57  ;;  %v655_v47 = vpop.permute.xlu1 %654 }
 0x11e   : > { %v715_v19 = vmul.f32 %v2188_v41, %v655_v47  ;;  %1621 = vset.pattern.permute.xlu1 %v1717_v36 }
 0x11f   : > { %v742_v35 = vadd.f32 %v726_v56, %v642_v18  ;;  %958 = vperm.xlu1 %1621, %v1775_v3  }
 0x120   : > { %v731_v38 = vadd.f32 %v715_v19, %v631_v63  ;;  %v671_v37 = vpop.permute.xlu0 %670  ;;  %v2223_v63 = vrot.slane %v1894_v27, %v811_v46 }
 0x121   : > { %v719_v22 = vmul.f32 %v2188_v41, %v671_v37 }
 0x122   : > { %v2212_v4 = vpop.permute.xlu1 %846 }
 0x123   : > { %v735_v1 = vadd.f32 %v719_v22, %v635_v34  ;;  %990 = vperm.xlu1 %1621, %v1807_v11  }
 0x125   : > { %v2215_v5 = vpop.permute.xlu0 %750 }
 0x126   : > { %v879_v53 = vpop.permute.xlu1 %878 }
 0x127   : > { %1623 = vset.pattern.permute.xlu1 %v1714_v20 }
 0x128   : > { %702 = vperm.xlu1 %1623, %v1826_v16  }
 0x129   : > { %v2220_v18 = vpop.permute.xlu0 %794 }
 0x12b   : > { %v659_v3 = vpop.permute.xlu1 %658 }
 0x12c   : > { %v716_v40 = vmul.f32 %v2188_v41, %v659_v3  ;;  %1624 = vset.pattern.permute.xlu1 %v2486_v39  ;;  %v717_v3 = vmul.f32 %v2188_v41, %v663_v32 }
 0x12d   : > { %862 = vperm.xlu1 %1624, %v1786_v6   ;;  %v799_v11 = vpop.permute.xlu0 %798 }
 0x12e   : > { %v2229_v34 = vadd.f32 %v716_v40, %v2144_v49  ;;  %v826_v55 = vmul.f32 %v2223_v63, %v799_v11  ;;  %v329_v11 = vmul.f32 %v1901_v30, %v1886_v25 }
 0x12f   : > { %v691_v26 = vpop.permute.xlu1 %690 }
 0x130   : > { %v2232_v57 = vadd.f32 %v826_v55, %v742_v35  ;;  %v724_v56 = vmul.f32 %v2188_v41, %v691_v26  ;;  %v413_v55 = vmul.f32 %v1946_v52, %v1942_v51 }
 0x131   : > { %1625 = vset.pattern.permute.xlu1 %v1714_v20  ;;  %v771_v47 = vpop.permute.xlu0 %770 }
 0x132   : > { %v2236_v19 = vadd.f32 %v724_v56, %v640_v9  ;;  %v819_v37 = vmul.f32 %v2223_v63, %v771_v47  ;;  %674 = vperm.xlu1 %1625, %v1791_v7  }
 0x134   : > { %v835_v22 = vadd.f32 %v819_v37, %v735_v1  ;;  %v2240_v46 = vpop.permute.xlu1 %882  ;;  %v911_v1 = vsub.s32 6, %v1884_v23  ;;  %v1011_v37 = vsub.s32 7, %v1884_v23  ;;  %v613_v23 = vmul.f32 %v2117_v8, %v2128_v0 }
 0x136   : > { %706 = vperm.xlu1 %1625, %v1823_v15   ;;  %v2243_v49 = vpop.permute.xlu0 %850  ;;  %v2266_v25 = vrot.slane %v1894_v27, %v911_v1 }
 0x138   : > { %v921_v1 = vmul.f32 %v2266_v25, %v879_v53 }
 0x139   : > { %v563_v35 = vpop.permute.xlu1 %562 }
 0x13a   : > { %v617_v40 = vmul.f32 %v2117_v8, %v563_v35  ;;  %1626 = vset.pattern.permute.xlu1 %v2486_v39  ;;  %v887_v20 = vpop.permute.xlu0 %886  ;;  %v429_v35 = vadd.f32 %v413_v55, %v329_v11 }
 0x13b   : > { %898 = vperm.xlu1 %1626, %v1815_v13  }
 0x13c   : > { %v633_v9 = vadd.f32 %v617_v40, %v2049_v61  ;;  %v721_v61 = vmul.f32 %v2188_v41, %v2147_v58  ;;  %v821_v40 = vmul.f32 %v2223_v63, %v2185_v14  ;;  %v923_v58 = vmul.f32 %v2266_v25, %v887_v20 }
 0x13d   : > { %v330_v14 = vmul.f32 %v1901_v30, %v1897_v29  ;;  %v414_v20 = vmul.f32 %v1946_v52, %v1940_v50 }
 0x13e   : > { %v755_v26 = vpop.permute.xlu1 %754  ;;  %v2255_v56 = vpop.permute.xlu0 %894  ;;  %v2257_v32 = vadd.f32 %v717_v3, %v633_v9  ;;  %v513_v3 = vmul.f32 %v2035_v2, %v2029_v48  ;;  %v2284_v48 = vrot.slane %v1894_v27, %v1011_v37  ;;  %v514_v27 = vmul.f32 %v2035_v2, %v2031_v31  ;;  %v2309_v31 = vld [vmem:[%s2482_s2] ss:$0 sm:$0xff] }
 0x13f   : > { %v815_v47 = vmul.f32 %v2223_v63, %v755_v26  ;;  %1628 = vset.pattern.permute.xlu1 %v1715_v21  ;;  %v430_v52 = vadd.f32 %v414_v20, %v330_v14 }
 0x140   : > { %802 = vperm.xlu1 %1628, %v1826_v16   ;;  %v529_v0 = vadd.f32 %v513_v3, %v429_v35 }
 0x141   : > { %v2268_v51 = vadd.f32 %v815_v47, %v731_v38  ;;  %v737_v38 = vadd.f32 %v721_v61, %v2131_v43  ;;  %v713_v43 = vmul.f32 %v2188_v41, %v2182_v33  ;;  %v614_v33 = vmul.f32 %v2117_v8, %v2134_v17 }
 0x142   : > { %v787_v9 = vpop.permute.xlu1 %786  ;;  %v2274_v26 = vpop.permute.xlu0 %866  ;;  %v629_v30 = vadd.f32 %v613_v23, %v529_v0  ;;  %v813_v17 = vmul.f32 %v2223_v63, %v2173_v59 }
 0x143   : > { %v823_v39 = vmul.f32 %v2223_v63, %v787_v9  ;;  %v837_v53 = vadd.f32 %v821_v40, %v737_v38  ;;  %v530_v40 = vadd.f32 %v514_v27, %v430_v52 }
 0x144   : > { %1629 = vset.pattern.permute.xlu1 %v1717_v36  ;;  %v729_v37 = vadd.f32 %v713_v43, %v629_v30 }
 0x145   : > { %v839_v11 = vadd.f32 %v823_v39, %v2201_v12  ;;  %962 = vperm.xlu1 %1629, %v1786_v6   ;;  %v937_v50 = vadd.f32 %v921_v1, %v837_v53  ;;  %v518_v6 = vmul.f32 %v2035_v2, %v2076_v44  ;;  %v714_v44 = vmul.f32 %v2188_v41, %v2153_v10 }
 0x146   : > { %v871_v55 = vpop.permute.xlu0 %870  ;;  %v630_v23 = vadd.f32 %v614_v33, %v530_v40  ;;  %v829_v38 = vadd.f32 %v813_v17, %v729_v37  ;;  %v814_v1 = vmul.f32 %v2223_v63, %v2215_v5 }
 0x147   : > { %v919_v47 = vmul.f32 %v2266_v25, %v871_v55  ;;  %v979_v61 = vpop.permute.xlu1 %978  ;;  %v2297_v29 = vadd.f32 %v923_v58, %v839_v11  ;;  %v914_v11 = vmul.f32 %v2266_v25, %v2243_v49 }
 0x148   : > { %v1021_v39 = vmul.f32 %v2284_v48, %v979_v61  ;;  %v730_v10 = vadd.f32 %v714_v44, %v630_v23  ;;  %v822_v61 = vmul.f32 %v2223_v63, %v2203_v42 }
 0x149   : > { %v2304_v12 = vadd.f32 %v919_v47, %v835_v22  ;;  %1630 = vset.pattern.permute.xlu1 %v1715_v21  ;;  %v913_v22 = vmul.f32 %v2266_v25, %v2212_v4  ;;  %v534_v21 = vadd.f32 %v518_v6, %v1968_v24  ;;  %v2487_v6 = vmov 6  }
 0x14a   : > { %v1037_v35 = vadd.f32 %v1021_v39, %v937_v50  ;;  %774 = vperm.xlu1 %1630, %v1791_v7   ;;  %v2313_v3 = vpop.permute.xlu0 %906  ;;  %v830_v43 = vadd.f32 %v814_v1, %v730_v10  ;;  %v838_v42 = vadd.f32 %v822_v61, %v2194_v54 }
 0x14b   : > { %v929_v4 = vadd.f32 %v913_v22, %v829_v38  ;;  %v1699_v22 = vld [vmem:[%s1764_s24 + $0x38] sm:$0xff] }
 0x14c   : > { %v1060_v9 = vadd.f32 %v2309_v31, %v1037_v35  ;;  %v567_v58 = vpop.permute.xlu1 %566  ;;  %v930_v5 = vadd.f32 %v914_v11, %v830_v43 }
 0x14d   : > { %v618_v7 = vmul.f32 %v2117_v8, %v567_v58 }
 0x14e   : > { %v1423_v14 = vmul.f32 -1.442695, %v1060_v9  ;;  %806 = vperm.xlu1 %1630, %v1823_v15  }
 0x14f   : > { %v2327_v59 = vadd.f32 %v618_v7, %v534_v21  ;;  %v947_v20 = vpop.permute.xlu0 %946  ;;  %v1700_v21 = vld [vmem:[%s1764_s24 + $0x30] sm:$0xff] }
 0x150   : > { %v1013_v24 = vmul.f32 %v2284_v48, %v947_v20  ;;  %1635 = vpow2.f32 %v1423_v14  ;;  %v825_v14 = vmul.f32 %v2223_v63, %v2220_v18 }
 0x151   : > { %v759_v0 = vpop.permute.xlu1 %758 }
 0x152   : > { %v1029_v53 = vadd.f32 %v1013_v24, %v929_v4  ;;  %v816_v55 = vmul.f32 %v2223_v63, %v759_v0  ;;  %1631 = vset.pattern.permute.xlu1 %v1717_v36  ;;  %v1701_v0 = vld [vmem:[%s1764_s24 + $0x78] sm:$0xff] }
 0x153   : > { %998 = vperm.xlu1 %1631, %v1815_v13   ;;  %v951_v15 = vpop.permute.xlu0 %950  ;;  %v922_v13 = vmul.f32 %v2266_v25, %v2240_v46 }
 0x154   : > { %v1052_v27 = vadd.f32 %v2309_v31, %v1029_v53  ;;  %v2337_v47 = vadd.f32 %v816_v55, %v2229_v34  ;;  %v1014_v49 = vmul.f32 %v2284_v48, %v951_v15 }
 0x155   : > { %v791_v30 = vpop.permute.xlu1 %790  ;;  %v938_v44 = vadd.f32 %v922_v13, %v838_v42 }
 0x156   : > { %v1415_v50 = vmul.f32 -1.442695, %v1052_v27  ;;  %v1030_v39 = vadd.f32 %v1014_v49, %v930_v5  ;;  %v824_v52 = vmul.f32 %v2223_v63, %v791_v30 }
 0x157   : > { %1632 = vset.pattern.permute.xlu1 %v2487_v6 }
 0x158   : > { %v1053_v33 = vadd.f32 %v2309_v31, %v1030_v39  ;;  %v2348_v34 = vadd.f32 %v824_v52, %v2236_v19  ;;  %902 = vperm.xlu1 %1632, %v1826_v16   ;;  %1637 = vpow2.f32 %v1415_v50 }
 0x15a   : > { %v1636_v37 = vpop.eup %1635  ;;  %v1416_v35 = vmul.f32 -1.442695, %v1053_v33  ;;  %v983_v40 = vpop.permute.xlu1 %982 }
 0x15b   : > { %v1022_v17 = vmul.f32 %v2284_v48, %v983_v40  ;;  %v1124_v46 = vadd.f32 1.0, %v1636_v37 }
 0x15c   : > { %1639 = vpow2.f32 %v1416_v35  ;;  %874 = vperm.xlu1 %1632, %v1699_v22  }
 0x15d   : > { %v1038_v9 = vadd.f32 %v1022_v17, %v938_v44  ;;  %1641 = vrcp.f32 %v1124_v46 }
 0x15f   : > { %v1061_v19 = vadd.f32 %v2309_v31, %v1038_v9  ;;  %v503_v58 = vpop.permute.xlu1 %502 }
 0x160   : > { %v527_v16 = vmul.f32 %v2035_v2, %v503_v58  ;;  %1634 = vset.pattern.permute.xlu1 %v1717_v36  ;;  %v925_v36 = vmul.f32 %v2266_v25, %v2255_v56  ;;  %v995_v58 = vpop.permute.xlu0 %994 }
 0x161   : > { %v1424_v54 = vmul.f32 -1.442695, %v1061_v19  ;;  %970 = vperm.xlu1 %1634, %v1700_v21   ;;  %v1025_v21 = vmul.f32 %v2284_v48, %v995_v58 }
 0x162   : > { %v1638_v23 = vpop.eup %1637  ;;  %v543_v7 = vadd.f32 %v527_v16, %v2015_v45 }
 0x163   : > { %1643 = vpow2.f32 %v1424_v54  ;;  %v1116_v38 = vadd.f32 1.0, %v1638_v23 }
 0x164   : > { %v695_v1 = vpop.permute.xlu1 %694 }
 0x165   : > { %v725_v10 = vmul.f32 %v2188_v41, %v695_v1  ;;  %974 = vperm.xlu1 %1634, %v1699_v22   ;;  %1645 = vrcp.f32 %v1116_v38 }
 0x166   : > { %v1640_v20 = vpop.eup %1639 }
 0x167   : > { %v1642_v4 = vpop.eup %1641  ;;  %v1117_v11 = vadd.f32 1.0, %v1640_v20  ;;  %v741_v24 = vadd.f32 %v725_v10, %v2150_v62 }
 0x168   : > { %1510 = vmatprep.mubr.f32.mxu1 %v1642_v4 }
 0x169   : > { %1647 = vrcp.f32 %v1117_v11  ;;  %v841_v45 = vadd.f32 %v825_v14, %v741_v24  ;;  %1006 = vperm.xlu1 %1634, %v1701_v0   ;;  %v855_v43 = vpop.permute.xlu1 %854 }
 0x16b   : > { %v941_v53 = vadd.f32 %v925_v36, %v841_v45 }
 0x16d   : > { %v1644_v18 = vpop.eup %1643  ;;  %v1041_v1 = vadd.f32 %v1025_v21, %v941_v53 }
 0x16e   : > { %v1125_v55 = vadd.f32 1.0, %v1644_v18  ;;  %v507_v15 = vpop.permute.xlu1 %506 }
 0x16f   : > { %v1646_v5 = vpop.eup %1645  ;;  %v528_v27 = vmul.f32 %v2035_v2, %v507_v15  ;;  %v1064_v45 = vadd.f32 %v2309_v31, %v1041_v1 }
 0x170   : > { %1649 = vrcp.f32 %v1125_v55  ;;  %1498 = vmatprep.mubr.f32.mxu0 %v1646_v5 }
 0x171   : > { %v544_v56 = vadd.f32 %v528_v27, %v2017_v28  ;;  %v915_v28 = vmul.f32 %v2266_v25, %v855_v43  ;;  %v1427_v5 = vmul.f32 -1.442695, %v1064_v45 }
 0x173   : > { %v1648_v49 = vpop.eup %1647  ;;  %v667_v61 = vpop.permute.xlu1 %666  ;;  %v931_v37 = vadd.f32 %v915_v28, %v2268_v51 }
 0x174   : > { %v718_v62 = vmul.f32 %v2188_v41, %v667_v61  ;;  %1499 = vmatmul.mubr.f32.vlgmr.msra.gmra.mrb[0].mxu0 %v1648_v49 }
 0x176   : > { %v734_v30 = vadd.f32 %v718_v62, %v2327_v59 }
 0x178   : > { %v859_v50 = vpop.permute.xlu1 %858 }
 0x17a   : > { %v1650_v39 = vpop.eup %1649 }
 0x17b   : > { %1511 = vmatmul.mubr.f32.vlgmr.msra.gmra.mrb[0].mxu1 %v1650_v39 }
 0x17c   : > { %v891_v52 = vpop.permute.xlu1 %890 }
 0x17d   : > { %v924_v36 = vmul.f32 %v2266_v25, %v891_v52 }
 0x17f   : > { %v940_v18 = vadd.f32 %v924_v36, %v2348_v34  ;;  %v928_v36 = vmul.f32 %v2266_v25, %v2313_v3 }
 0x181   : > { %v603_v13 = vpop.permute.xlu1 %602 }
 0x182   : > { %v627_v6 = vmul.f32 %v2117_v8, %v603_v13 }
 0x184   : > { %v2371_v33 = vadd.f32 %v627_v6, %v543_v7  ;;  %v918_v7 = vmul.f32 %v2266_v25, %v2274_v26 }
 0x186   : > { %v2373_v2 = vpop.permute.xlu1 %762 }
 0x18b   : > { %v955_v42 = vpop.permute.xlu1 %954 }
 0x18c   : > { %v1015_v35 = vmul.f32 %v2284_v48, %v955_v42  ;;  %v967_v42 = vpop.permute.xlu0 %966 }
 0x18e   : > { %v1031_v40 = vadd.f32 %v1015_v35, %v931_v37 }
 0x18f   : > { %v987_v59 = vpop.permute.xlu1 %986 }
 0x190   : > { %v1054_v44 = vadd.f32 %v2309_v31, %v1031_v40  ;;  %v1023_v17 = vmul.f32 %v2284_v48, %v987_v59  ;;  %v1018_v40 = vmul.f32 %v2284_v48, %v967_v42 }
 0x192   : > { %v1417_v46 = vmul.f32 -1.442695, %v1054_v44  ;;  %v1039_v22 = vadd.f32 %v1023_v17, %v2297_v29  ;;  %v916_v29 = vmul.f32 %v2266_v25, %v859_v50 }
 0x194   : > { %1651 = vpow2.f32 %v1417_v46  ;;  %v1062_v9 = vadd.f32 %v2309_v31, %v1039_v22  ;;  %v607_v19 = vpop.permute.xlu1 %606  ;;  %v817_v46 = vmul.f32 %v2223_v63, %v2373_v2 }
 0x195   : > { %v628_v16 = vmul.f32 %v2117_v8, %v607_v19  ;;  %v932_v8 = vadd.f32 %v916_v29, %v2337_v47 }
 0x196   : > { %v1425_v54 = vmul.f32 -1.442695, %v1062_v9 }
 0x197   : > { %v2383_v51 = vadd.f32 %v628_v16, %v544_v56 }
 0x198   : > { %1653 = vpow2.f32 %v1425_v54  ;;  %v833_v54 = vadd.f32 %v817_v46, %v2257_v32 }
 0x199   : > { %v767_v23 = vpop.permute.xlu1 %766 }
 0x19a   : > { %v818_v38 = vmul.f32 %v2223_v63, %v767_v23 }
 0x19c   : > { %v834_v14 = vadd.f32 %v818_v38, %v734_v30 }
 0x19e   : > { %v1652_v10 = vpop.eup %1651  ;;  %v934_v20 = vadd.f32 %v918_v7, %v834_v14  ;;  %v959_v4 = vpop.permute.xlu1 %958 }
 0x19f   : > { %v1118_v11 = vadd.f32 1.0, %v1652_v10  ;;  %v1016_v24 = vmul.f32 %v2284_v48, %v959_v4 }
 0x1a0   : > { %v1034_v44 = vadd.f32 %v1018_v40, %v934_v20 }
 0x1a1   : > { %1655 = vrcp.f32 %v1118_v11  ;;  %v1032_v26 = vadd.f32 %v1016_v24, %v932_v8 }
 0x1a2   : > { %v1654_v0 = vpop.eup %1653  ;;  %v991_v43 = vpop.permute.xlu1 %990  ;;  %v1057_v9 = vadd.f32 %v2309_v31, %v1034_v44 }
 0x1a3   : > { %v1126_v53 = vadd.f32 1.0, %v1654_v0  ;;  %v1055_v55 = vadd.f32 %v2309_v31, %v1032_v26  ;;  %v1024_v15 = vmul.f32 %v2284_v48, %v991_v43 }
 0x1a4   : > { %v1420_v21 = vmul.f32 -1.442695, %v1057_v9 }
 0x1a5   : > { %1657 = vrcp.f32 %v1126_v53  ;;  %v1418_v47 = vmul.f32 -1.442695, %v1055_v55  ;;  %v1040_v27 = vadd.f32 %v1024_v15, %v940_v18 }
 0x1a7   : > { %1659 = vpow2.f32 %v1418_v47  ;;  %v1063_v56 = vadd.f32 %v2309_v31, %v1040_v27  ;;  %v703_v49 = vpop.permute.xlu1 %702  ;;  %v1003_v27 = vpop.permute.xlu0 %1002 }
 0x1a8   : > { %1661 = vpow2.f32 %v1427_v5  ;;  %v727_v45 = vmul.f32 %v2188_v41, %v703_v49 }
 0x1a9   : > { %v1426_v61 = vmul.f32 -1.442695, %v1063_v56 }
 0x1aa   : > { %v743_v15 = vadd.f32 %v727_v45, %v2371_v33 }
 0x1ab   : > { %v1656_v62 = vpop.eup %1655  ;;  %1663 = vpow2.f32 %v1426_v61 }
 0x1ac   : > { %v863_v30 = vpop.permute.xlu1 %862  ;;  %1501 = vmatprep.mubr.f32.mxu0 %v1656_v62 }
 0x1ad   : > { %v917_v19 = vmul.f32 %v2266_v25, %v863_v30  ;;  %v1027_v30 = vmul.f32 %v2284_v48, %v1003_v27 }
 0x1af   : > { %v1658_v34 = vpop.eup %1657  ;;  %v933_v7 = vadd.f32 %v917_v19, %v833_v54 }
 0x1b0   : > { %1513 = vmatprep.mubr.f32.mxu1 %v1658_v34 }
 0x1b1   : > { %v1660_v50 = vpop.eup %1659  ;;  %v2398_v39 = vpop.permute.xlu1 %674 }
 0x1b2   : > { %v1662_v52 = vpop.eup %1661  ;;  %v1119_v13 = vadd.f32 1.0, %v1660_v50  ;;  %v720_v33 = vmul.f32 %v2188_v41, %v2398_v39 }
 0x1b3   : > { %v1128_v28 = vadd.f32 1.0, %v1662_v52 }
 0x1b4   : > { %1665 = vrcp.f32 %v1119_v13  ;;  %v736_v42 = vadd.f32 %v720_v33, %v2171_v60 }
 0x1b5   : > { %v1664_v6 = vpop.eup %1663  ;;  %v707_v37 = vpop.permute.xlu1 %706 }
 0x1b6   : > { %v1127_v35 = vadd.f32 1.0, %v1664_v6  ;;  %v728_v14 = vmul.f32 %v2188_v41, %v707_v37 }
 0x1b8   : > { %1667 = vrcp.f32 %v1127_v35  ;;  %v744_v4 = vadd.f32 %v728_v14, %v2383_v51 }
 0x1b9   : > { %1669 = vrcp.f32 %v1128_v28 }
 0x1ba   : > { %v899_v59 = vpop.permute.xlu1 %898  ;;  %1671 = vpow2.f32 %v1420_v21 }
 0x1bb   : > { %v926_v8 = vmul.f32 %v2266_v25, %v899_v59 }
 0x1bd   : > { %v942_v43 = vadd.f32 %v926_v8, %v2232_v57 }
 0x1be   : > { %v1666_v17 = vpop.eup %1665 }
 0x1bf   : > { %v803_v22 = vpop.permute.xlu1 %802  ;;  %1502 = vmatmul.mubr.f32.gmra.mrb[2].mxu0 %v1666_v17 }
 0x1c0   : > { %v827_v53 = vmul.f32 %v2223_v63, %v803_v22 }
 0x1c2   : > { %v1668_v58 = vpop.eup %1667  ;;  %v843_v56 = vadd.f32 %v827_v53, %v743_v15 }
 0x1c3   : > { %v1670_v16 = vpop.eup %1669  ;;  %1514 = vmatmul.mubr.f32.gmra.mrb[2].mxu1 %v1668_v58 }
 0x1c4   : > { %v963_v23 = vpop.permute.xlu1 %962  ;;  %1516 = vmatprep.mubr.f32.mxu1 %v1670_v16  ;;  %v1672_v24 = vpop.eup %1671 }
 0x1c5   : > { %v1017_v38 = vmul.f32 %v2284_v48, %v963_v23  ;;  %v1121_v51 = vadd.f32 1.0, %v1672_v24 }
 0x1c7   : > { %v1033_v29 = vadd.f32 %v1017_v38, %v933_v7 }
 0x1c9   : > { %v1056_v2 = vadd.f32 %v2309_v31, %v1033_v29  ;;  %v775_v1 = vpop.permute.xlu1 %774 }
 0x1ca   : > { %v820_v13 = vmul.f32 %v2223_v63, %v775_v1 }
 0x1cb   : > { %v1419_v10 = vmul.f32 -1.442695, %v1056_v2 }
 0x1cc   : > { %v836_v59 = vadd.f32 %v820_v13, %v736_v42 }
 0x1cd   : > { %1673 = vpow2.f32 %v1419_v10  ;;  %v807_v20 = vpop.permute.xlu1 %806 }
 0x1ce   : > { %v828_v32 = vmul.f32 %v2223_v63, %v807_v20  ;;  %1675 = vrcp.f32 %v1121_v51 }
 0x1d0   : > { %v844_v11 = vadd.f32 %v828_v32, %v744_v4 }
 0x1d2   : > { %v999_v26 = vpop.permute.xlu1 %998  ;;  %v944_v0 = vadd.f32 %v928_v36, %v844_v11  ;;  %v1431_v36 = vld [vmem:[%s2484_s4] ss:$0 sm:$0xff] }
 0x1d3   : > { %v1026_v18 = vmul.f32 %v2284_v48, %v999_v26 }
 0x1d5   : > { %v1042_v55 = vadd.f32 %v1026_v18, %v942_v43 }
 0x1d7   : > { %v1674_v5 = vpop.eup %1673  ;;  %v1065_v47 = vadd.f32 %v2309_v31, %v1042_v55  ;;  %v903_v3 = vpop.permute.xlu1 %902 }
 0x1d8   : > { %v1120_v61 = vadd.f32 1.0, %v1674_v5  ;;  %v927_v49 = vmul.f32 %v2266_v25, %v903_v3  ;;  %v1676_v40 = vpop.eup %1675 }
 0x1d9   : > { %v1428_v62 = vmul.f32 -1.442695, %v1065_v47 }
 0x1da   : > { %1677 = vrcp.f32 %v1120_v61  ;;  %v943_v57 = vadd.f32 %v927_v49, %v843_v56 }
 0x1db   : > { %1679 = vpow2.f32 %v1428_v62  ;;  %v875_v34 = vpop.permute.xlu1 %874 }
 0x1dc   : > { %v1043_v50 = vadd.f32 %v1027_v30, %v943_v57  ;;  %v920_v37 = vmul.f32 %v2266_v25, %v875_v34 }
 0x1de   : > { %v1066_v52 = vadd.f32 %v2309_v31, %v1043_v50  ;;  %v936_v39 = vadd.f32 %v920_v37, %v836_v59 }
 0x1e0   : > { %v1429_v6 = vmul.f32 -1.442695, %v1066_v52  ;;  %v971_v28 = vpop.permute.xlu1 %970 }
 0x1e1   : > { %v1019_v35 = vmul.f32 %v2284_v48, %v971_v28 }
 0x1e2   : > { %1681 = vpow2.f32 %v1429_v6 }
 0x1e3   : > { %v1035_v44 = vadd.f32 %v1019_v35, %v2304_v12 }
 0x1e4   : > { %v1678_v17 = vpop.eup %1677  ;;  %v975_v46 = vpop.permute.xlu1 %974 }
 0x1e5   : > { %v1680_v41 = vpop.eup %1679  ;;  %v1058_v22 = vadd.f32 %v2309_v31, %v1035_v44  ;;  %v1020_v63 = vmul.f32 %v2284_v48, %v975_v46  ;;  %1504 = vmatprep.mubr.f32.mxu0 %v1678_v17 }
 0x1e6   : > { %v1129_v9 = vadd.f32 1.0, %v1680_v41  ;;  %1505 = vmatmul.mubr.f32.gmra.mrb[4].mxu0 %v1676_v40 }
 0x1e7   : > { %v1421_v60 = vmul.f32 -1.442695, %v1058_v22  ;;  %v1036_v25 = vadd.f32 %v1020_v63, %v936_v39 }
 0x1e8   : > { %1683 = vrcp.f32 %v1129_v9  ;;  %v1007_v19 = vpop.permute.xlu1 %1006 }
 0x1e9   : > { %1685 = vpow2.f32 %v1421_v60  ;;  %v1059_v58 = vadd.f32 %v2309_v31, %v1036_v25  ;;  %v1028_v12 = vmul.f32 %v2284_v48, %v1007_v19 }
 0x1eb   : > { %v1422_v16 = vmul.f32 -1.442695, %v1059_v58  ;;  %v1044_v54 = vadd.f32 %v1028_v12, %v944_v0 }
 0x1ec   : > { %v1682_v21 = vpop.eup %1681 }
 0x1ed   : > { %v1130_v23 = vadd.f32 1.0, %v1682_v21  ;;  %1687 = vpow2.f32 %v1422_v16  ;;  %v1067_v7 = vadd.f32 %v2309_v31, %v1044_v54 }
 0x1ef   : > { %1689 = vrcp.f32 %v1130_v23  ;;  %v1430_v38 = vmul.f32 -1.442695, %v1067_v7 }
 0x1f1   : > { %1691 = vpow2.f32 %v1430_v38 }
 0x1f2   : > { %v1684_v29 = vpop.eup %1683 }
 0x1f3   : > { %v1686_v2 = vpop.eup %1685  ;;  %1517 = vmatmul.mubr.f32.gmra.mrb[4].mxu1 %v1684_v29 }
 0x1f4   : > { %v1122_v1 = vadd.f32 1.0, %v1686_v2 }
 0x1f6   : > { %1693 = vrcp.f32 %v1122_v1 }
 0x1f7   : > { %v1688_v14 = vpop.eup %1687 }
 0x1f8   : > { %v1123_v10 = vadd.f32 1.0, %v1688_v14 }
 0x1f9   : > { %v1690_v20 = vpop.eup %1689 }
 0x1fa   : > { %1695 = vrcp.f32 %v1123_v10  ;;  %1519 = vmatprep.mubr.f32.mxu1 %v1690_v20 }
 0x1fb   : > { %v1692_v48 = vpop.eup %1691 }
 0x1fc   : > { %v1131_v4 = vadd.f32 1.0, %v1692_v48 }
 0x1fe   : > { %1697 = vrcp.f32 %v1131_v4 }
 0x200   : > { %v1694_v32 = vpop.eup %1693 }
 0x201   : > { %1507 = vmatprep.mubr.f32.mxu0 %v1694_v32 }
 0x204   : > { %v1696_v31 = vpop.eup %1695 }
 0x205   : > { %1508 = vmatmul.mubr.f32.gmra.mrb[6].mxu0 %v1696_v31 }
 0x208   : > { %v1698_v8 = vpop.eup %1697 }
 0x209   : > { %1520 = vmatmul.mubr.f32.gmra.mrb[6].mxu1 %v1698_v8 }
 0x247   : > { %v1500_v11 = vpop.f32.mrb[0].mxu0 }
 0x248   : > { %v1259_v24 = vadd.f32 %v1500_v11, %v1431_v36  ;;  %v1253_v45 = vpop.f32.mrb[1].mxu0 }
 0x249   : > { %v1254_v26 = vadd.f32 %v1431_v36, %v1253_v45 }
 0x24a   : > { %1334 = vst.msk [vmem:[%s2443_s19 + $0x8] sm:$0xff] %vm1332_vm0, %v1259_v24 }
 0x24b   : > { %1333 = vst.msk [vmem:[%s2443_s19] sm:$0xff] %vm1332_vm0, %v1254_v26 }
 0x24e   : > { %v1512_v0 = vpop.f32.mrb[0].mxu1 }
 0x24f   : > { %v1299_v43 = vadd.f32 %v1512_v0, %v1431_v36  ;;  %v1293_v18 = vpop.f32.mrb[1].mxu1 }
 0x250   : > { %v1294_v53 = vadd.f32 %v1431_v36, %v1293_v18 }
 0x251   : > { %1342 = vst.msk [vmem:[%s2443_s19 + $0x48] sm:$0xff] %vm1332_vm0, %v1299_v43 }
 0x252   : > { %1341 = vst.msk [vmem:[%s2443_s19 + $0x40] sm:$0xff] %vm1332_vm0, %v1294_v53 }
 0x292   : > { %v1503_v51 = vpop.f32.mrb[2].mxu0 }
 0x293   : > { %v1269_v55 = vadd.f32 %v1503_v51, %v1431_v36  ;;  %v1263_v15 = vpop.f32.mrb[3].mxu0 }
 0x294   : > { %v1264_v5 = vadd.f32 %v1431_v36, %v1263_v15 }
 0x295   : > { %1336 = vst.msk [vmem:[%s2443_s19 + $0x18] sm:$0xff] %vm1332_vm0, %v1269_v55 }
 0x296   : > { %1335 = vst.msk [vmem:[%s2443_s19 + $0x10] sm:$0xff] %vm1332_vm0, %v1264_v5  ;;  %v1515_v47 = vpop.f32.mrb[2].mxu1 }
 0x297   : > { %v1309_v3 = vadd.f32 %v1515_v47, %v1431_v36  ;;  %v1303_v27 = vpop.f32.mrb[3].mxu1 }
 0x298   : > { %v1304_v56 = vadd.f32 %v1431_v36, %v1303_v27 }
 0x299   : > { %1344 = vst.msk [vmem:[%s2443_s19 + $0x58] sm:$0xff] %vm1332_vm0, %v1309_v3 }
 0x29a   : > { %1343 = vst.msk [vmem:[%s2443_s19 + $0x50] sm:$0xff] %vm1332_vm0, %v1304_v56 }
 0x2b9   : > { %v1506_v61 = vpop.f32.mrb[4].mxu0 }
 0x2ba   : > { %v1279_v49 = vadd.f32 %v1506_v61, %v1431_v36  ;;  %v1273_v62 = vpop.f32.mrb[5].mxu0 }
 0x2bb   : > { %v1274_v57 = vadd.f32 %v1431_v36, %v1273_v62 }
 0x2bc   : > { %1338 = vst.msk [vmem:[%s2443_s19 + $0x28] sm:$0xff] %vm1332_vm0, %v1279_v49 }
 0x2bd   : > { %1337 = vst.msk [vmem:[%s2443_s19 + $0x20] sm:$0xff] %vm1332_vm0, %v1274_v57 }
 0x2c6   : > { %v1518_v30 = vpop.f32.mrb[4].mxu1 }
 0x2c7   : > { %v1319_v34 = vadd.f32 %v1518_v30, %v1431_v36  ;;  %v1313_v50 = vpop.f32.mrb[5].mxu1 }
 0x2c8   : > { %v1314_v33 = vadd.f32 %v1431_v36, %v1313_v50 }
 0x2c9   : > { %1346 = vst.msk [vmem:[%s2443_s19 + $0x68] sm:$0xff] %vm1332_vm0, %v1319_v34 }
 0x2ca   : > { %1345 = vst.msk [vmem:[%s2443_s19 + $0x60] sm:$0xff] %vm1332_vm0, %v1314_v33 }
 0x2d8   : > { %v1509_v52 = vpop.f32.mrb[6].mxu0 }
 0x2d9   : > { %v1289_v13 = vadd.f32 %v1509_v52, %v1431_v36  ;;  %v1283_v6 = vpop.f32.mrb[7].mxu0 }
 0x2da   : > { %v1284_v28 = vadd.f32 %v1431_v36, %v1283_v6 }
 0x2db   : > { %1340 = vst.msk [vmem:[%s2443_s19 + $0x38] sm:$0xff] %vm1332_vm0, %v1289_v13 }
 0x2dc   : > { %1339 = vst.msk [vmem:[%s2443_s19 + $0x30] sm:$0xff] %vm1332_vm0, %v1284_v28  ;;  %v1521_v42 = vpop.f32.mrb[6].mxu1 }
 0x2dd   : > { %v1329_v37 = vadd.f32 %v1521_v42, %v1431_v36  ;;  %v1323_v35 = vpop.f32.mrb[7].mxu1 }
 0x2de   : > { %v1324_v40 = vadd.f32 %v1431_v36, %v1323_v35 }
 0x2df   : > { %1348 = vst.msk [vmem:[%s2443_s19 + $0x78] sm:$0xff] %vm1332_vm0, %v1329_v37 }
 0x2e0   : > { %1347 = vst.msk [vmem:[%s2443_s19 + $0x70] sm:$0xff] %vm1332_vm0, %v1324_v40 }
 0x2e1 PF: > { %s15_s18 = sadd.s32 1, %s1708_s18  }
 0x2e2   : > { %p12_p4 = scmp.ge.s32.totalorder %s15_s18, 4  }
 0x2e4   :  { %14 = sbr.rel (!%p12_p4) target bundleno = 1 (0x1), region = 70 }

// kernel: tpu_custom_call.1
= control target key start
LH: loop header
LB: loop body
LE: loop exit
PB: predicated region body
PF: predicated region fallthrough
CT: control target
= control target key end

     0   :  { %s1748_s18 = smov 0   ;;  %s2480_s0 = inlined_call_operand.vmem [shape: f32[256,8], index: 0, kind: input, shape index: {}]   ;;  %s2481_s1 = inlined_call_operand.vmem [shape: f32[8,128], index: 1, kind: input, shape index: {}]   ;;  %s2482_s2 = inlined_call_operand.vmem [shape: f32[1,128], index: 2, kind: input, shape index: {}]   ;;  %s2483_s3 = inlined_call_operand.vmem [shape: f32[128,8], index: 3, kind: input, shape index: {}]   ;;  %s2484_s4 = inlined_call_operand.vmem [shape: f32[1,8], index: 4, kind: input, shape index: {}]   ;;  %s2485_s5 = inlined_call_operand.vmem [shape: f32[256,8], index: 5, kind: output, shape index: {}]  }
   0x1 LB: > { %s1405_s19 = sadd.s32 4294967295, %s1708_s18   ;;  %p1409_p0 = scmp.ge.s32.totalorder %s1708_s18, 1  ;;  %s1708_s18 = sphi %s1748_s18, %s15_s18  }
   0x2   : > { %p188_p1 = scmp.lt.s32.totalorder %s1708_s18, 3 }
   0x4   : > { %p189_p2 = pnand %p1409_p0, %p188_p1 }
   0x5   : > { %s1410_s20 = sshll.u32 (!%p189_p2), %s1405_s19, 4  ;;  %v1710_v0 = vmov (!%p189_p2), 0   ;;  %v1711_v17 = vmov (!%p189_p2), 1   ;;  %v1712_v18 = vmov (!%p189_p2), 2   ;;  %v1713_v19 = vmov (!%p189_p2), 3   ;;  %v1894_v27 = vld [vmem:[%s2481_s1] sm:$0xff] (!%p189_p2) }
   0x6   : > { %192 = sbr.rel (%p189_p2) target bundleno = 737 (0x2e1), region = 40  ;;  %1587 = vset.pattern.permute.xlu1 (!%p189_p2), %v1710_v0  ;;  %1586 = vset.pattern.permute.xlu0 (!%p189_p2), %v1710_v0  ;;  %p217_p3 = scmp.lt.s32.totalorder (!%p189_p2), %s1410_s20, 31  ;;  %v1714_v20 = vmov (!%p189_p2), 4   ;;  %v1715_v21 = vmov (!%p189_p2), 5   ;;  %v325_v22 = vlaneseq (!%p189_p2)  ;;  %v2486_v39 = vmov (!%p189_p2), 6  }
   0x7   : > { %vm1332_vm0 = vcmask (!%p189_p2), 64512  }
   0x8   : > { %v1884_v23 = vshrl.u32 (!%p189_p2), %v325_v22, 7 }
   0xa   : > { %v327_v26 = vsub.s32 (!%p189_p2), 0, %v1884_v23  ;;  %v411_v49 = vsub.s32 (!%p189_p2), 1, %v1884_v23 }
   0xc   : > { %v1901_v30 = vrot.slane (!%p189_p2), %v1894_v27, %v327_v26  ;;  %v1946_v52 = vrot.slane (!%p189_p2), %v1894_v27, %v411_v49 }
   0xd   : > { %s2489_s20 = smov (!%p217_p3, %s1410_s20), 31 }
   0xe   : > { %s1411_s21 = sshll.u32 %s2489_s20, 3 }
   0xf   : > { %s1764_s24 = scalar_lea.vmem %s2480_s0, %s1411_s21  ;;  %s2443_s19 = scalar_lea.vmem %s2485_s5, %s1411_s21 }
  0x10   : > { %v1767_v1 = vld [vmem:[%s1764_s24 + $0x10] sm:$0xff]  ;;  %v1770_v2 = vld [vmem:[%s1764_s24] sm:$0xff]  ;;  %v1775_v3 = vld [vmem:[%s1764_s24 + $0x18] sm:$0xff] }
  0x11   : > { %257 = vperm.xlu1 %1587, %v1767_v1   ;;  %247 = vperm.xlu0 %1586, %v1770_v2   ;;  %v1778_v4 = vld [vmem:[%s1764_s24 + $0x8] sm:$0xff]  ;;  %v1786_v6 = vld [vmem:[%s1764_s24 + $0x20] sm:$0xff]  ;;  %v1791_v7 = vld [vmem:[%s1764_s24 + $0x38] sm:$0xff] }
  0x12   : > { %v1783_v5 = vld [vmem:[%s1764_s24 + $0x28] sm:$0xff]  ;;  %v1794_v8 = vld [vmem:[%s1764_s24 + $0x30] sm:$0xff]  ;;  %v1802_v10 = vld [vmem:[%s1764_s24 + $0x40] sm:$0xff] }
  0x13   : > { %v1799_v9 = vld [vmem:[%s1764_s24 + $0x48] sm:$0xff]  ;;  %v1807_v11 = vld [vmem:[%s1764_s24 + $0x58] sm:$0xff]  ;;  %v1810_v12 = vld [vmem:[%s1764_s24 + $0x50] sm:$0xff] }
  0x14   : > { %v1815_v13 = vld [vmem:[%s1764_s24 + $0x68] sm:$0xff]  ;;  %v1818_v14 = vld [vmem:[%s1764_s24 + $0x60] sm:$0xff]  ;;  %v1823_v15 = vld [vmem:[%s1764_s24 + $0x78] sm:$0xff] }
  0x15   : > { %262 = vperm.xlu1 %1587, %v1775_v3   ;;  %252 = vperm.xlu0 %1586, %v1778_v4   ;;  %v1826_v16 = vld [vmem:[%s1764_s24 + $0x70] sm:$0xff] }
  0x19   : > { %272 = vperm.xlu1 %1587, %v1783_v5   ;;  %267 = vperm.xlu0 %1586, %v1786_v6  }
  0x1d   : > { %282 = vperm.xlu1 %1587, %v1791_v7   ;;  %277 = vperm.xlu0 %1586, %v1794_v8  }
  0x21   : > { %292 = vperm.xlu1 %1587, %v1799_v9   ;;  %287 = vperm.xlu0 %1586, %v1802_v10  }
  0x25   : > { %302 = vperm.xlu1 %1587, %v1807_v11   ;;  %297 = vperm.xlu0 %1586, %v1810_v12  }
  0x29   : > { %312 = vperm.xlu1 %1587, %v1815_v13   ;;  %307 = vperm.xlu0 %1586, %v1818_v14  }
  0x2d   : > { %322 = vperm.xlu1 %1587, %v1823_v15   ;;  %317 = vperm.xlu0 %1586, %v1826_v16  }
  0x31   : > { %1589 = vset.pattern.permute.xlu1 %v1711_v17  ;;  %1588 = vset.pattern.permute.xlu0 %v1711_v17 }
  0x32   : > { %350 = vperm.xlu1 %1589, %v1778_v4   ;;  %346 = vperm.xlu0 %1588, %v1770_v2  }
  0x36   : > { %354 = vperm.xlu1 %1589, %v1767_v1   ;;  %358 = vperm.xlu0 %1588, %v1775_v3  }
  0x3a   : > { %362 = vperm.xlu1 %1589, %v1786_v6   ;;  %366 = vperm.xlu0 %1588, %v1783_v5  }
  0x3e   : > { %370 = vperm.xlu1 %1589, %v1794_v8   ;;  %374 = vperm.xlu0 %1588, %v1791_v7  }
  0x42   : > { %378 = vperm.xlu1 %1589, %v1802_v10   ;;  %382 = vperm.xlu0 %1588, %v1799_v9  }
  0x46   : > { %386 = vperm.xlu1 %1589, %v1810_v12   ;;  %390 = vperm.xlu0 %1588, %v1807_v11  }
  0x4a   : > { %394 = vperm.xlu1 %1589, %v1818_v14   ;;  %398 = vperm.xlu0 %1588, %v1815_v13  }
  0x4e   : > { %402 = vperm.xlu1 %1589, %v1826_v16   ;;  %406 = vperm.xlu0 %1588, %v1823_v15  }
  0x52   : > { %1590 = vset.pattern.permute.xlu1 %v1712_v18  ;;  %1591 = vset.pattern.permute.xlu0 %v1712_v18 }
  0x53   : > { %446 = vperm.xlu1 %1590, %v1770_v2   ;;  %450 = vperm.xlu0 %1591, %v1778_v4  }
  0x57   : > { %454 = vperm.xlu1 %1590, %v1767_v1   ;;  %462 = vperm.xlu0 %1591, %v1786_v6  }
  0x5b   : > { %458 = vperm.xlu1 %1590, %v1775_v3   ;;  %470 = vperm.xlu0 %1591, %v1794_v8  }
  0x5f   : > { %466 = vperm.xlu1 %1590, %v1783_v5   ;;  %478 = vperm.xlu0 %1591, %v1802_v10  }
  0x63   : > { %474 = vperm.xlu1 %1590, %v1791_v7   ;;  %486 = vperm.xlu0 %1591, %v1810_v12  }
  0x67   : > { %482 = vperm.xlu1 %1590, %v1799_v9   ;;  %494 = vperm.xlu0 %1591, %v1818_v14  }
  0x6b   : > { %490 = vperm.xlu1 %1590, %v1807_v11   ;;  %498 = vperm.xlu0 %1591, %v1815_v13  }
  0x6f   : > { %1592 = vset.pattern.permute.xlu1 %v1713_v19  ;;  %1600 = vset.pattern.permute.xlu0 %v1713_v19 }
  0x70   : > { %546 = vperm.xlu1 %1592, %v1770_v2   ;;  %578 = vperm.xlu0 %1600, %v1802_v10  }
  0x74   : > { %550 = vperm.xlu1 %1592, %v1778_v4   ;;  %586 = vperm.xlu0 %1600, %v1810_v12  }
  0x78   : > { %582 = vperm.xlu1 %1592, %v1799_v9   ;;  %558 = vperm.xlu0 %1600, %v1775_v3  }
  0x7c   : > { %1593 = vset.pattern.permute.xlu1 %v1714_v20  ;;  %594 = vperm.xlu0 %1600, %v1818_v14  }
  0x7d   : > { %678 = vperm.xlu1 %1593, %v1802_v10  }
  0x80   : > { %598 = vperm.xlu0 %1600, %v1815_v13  }
  0x81   : > { %650 = vperm.xlu1 %1593, %v1778_v4  }
  0x84   : > { %570 = vperm.xlu0 %1600, %v1794_v8  }
  0x85   : > { %1594 = vset.pattern.permute.xlu1 %v1713_v19 }
  0x86   : > { %554 = vperm.xlu1 %1594, %v1767_v1  }
  0x88   : > { %574 = vperm.xlu0 %1600, %v1791_v7  }
  0x8a   : > { %1595 = vset.pattern.permute.xlu1 %v1715_v21 }
  0x8b   : > { %746 = vperm.xlu1 %1595, %v1770_v2  }
  0x8c   : > { %1618 = vset.pattern.permute.xlu0 %v1714_v20 }
  0x8d   : > { %646 = vperm.xlu0 %1618, %v1770_v2  }
  0x8f   : > { %778 = vperm.xlu1 %1595, %v1802_v10  }
  0x90   : > { %v258_v24 = vpop.permute.xlu1 %257  ;;  %v1886_v25 = vpop.permute.xlu0 %247 }
  0x91   : > { %682 = vperm.xlu0 %1618, %v1799_v9   ;;  %v331_v55 = vmul.f32 %v1901_v30, %v258_v24 }
  0x93   : > { %1596 = vset.pattern.permute.xlu1 %v1713_v19 }
  0x94   : > { %v263_v28 = vpop.permute.xlu1 %262  ;;  %590 = vperm.xlu1 %1596, %v1807_v11   ;;  %v1897_v29 = vpop.permute.xlu0 %252 }
  0x95   : > { %686 = vperm.xlu0 %1618, %v1810_v12   ;;  %v332_v56 = vmul.f32 %v1901_v30, %v263_v28 }
  0x98   : > { %v273_v31 = vpop.permute.xlu1 %272  ;;  %1597 = vset.pattern.permute.xlu1 %v1715_v21  ;;  %v268_v32 = vpop.permute.xlu0 %267 }
  0x99   : > { %782 = vperm.xlu1 %1597, %v1799_v9   ;;  %662 = vperm.xlu0 %1618, %v1786_v6   ;;  %v333_v33 = vmul.f32 %v1901_v30, %v268_v32  ;;  %v334_v63 = vmul.f32 %v1901_v30, %v273_v31 }
  0x9c   : > { %v283_v34 = vpop.permute.xlu1 %282  ;;  %v278_v35 = vpop.permute.xlu0 %277 }
  0x9d   : > { %1598 = vset.pattern.permute.xlu1 %v1714_v20  ;;  %698 = vperm.xlu0 %1618, %v1815_v13   ;;  %v335_v36 = vmul.f32 %v1901_v30, %v278_v35  ;;  %v336_v32 = vmul.f32 %v1901_v30, %v283_v34 }
  0x9e   : > { %654 = vperm.xlu1 %1598, %v1767_v1  }
  0xa0   : > { %v1911_v37 = vpop.permute.xlu1 %292  ;;  %v1913_v38 = vpop.permute.xlu0 %287 }
  0xa1   : > { %670 = vperm.xlu0 %1618, %v1794_v8  }
  0xa2   : > { %1599 = vset.pattern.permute.xlu1 %v2486_v39 }
  0xa3   : > { %846 = vperm.xlu1 %1599, %v1770_v2  }
  0xa4   : > { %v303_v40 = vpop.permute.xlu1 %302  ;;  %v298_v41 = vpop.permute.xlu0 %297 }
  0xa5   : > { %1622 = vset.pattern.permute.xlu0 %v1715_v21  ;;  %v1920_v42 = vmul.f32 %v1901_v30, %v298_v41 }
  0xa6   : > { %750 = vperm.xlu0 %1622, %v1778_v4  }
  0xa7   : > { %878 = vperm.xlu1 %1599, %v1802_v10  }
  0xa8   : > { %v1924_v43 = vpop.permute.xlu1 %312  ;;  %v308_v44 = vpop.permute.xlu0 %307 }
  0xa9   : > { %v1927_v45 = vmul.f32 %v1901_v30, %v308_v44 }
  0xaa   : > { %794 = vperm.xlu0 %1622, %v1818_v14  }
  0xab   : > { %1601 = vset.pattern.permute.xlu1 %v1714_v20 }
  0xac   : > { %v1931_v46 = vpop.permute.xlu1 %322  ;;  %658 = vperm.xlu1 %1601, %v1775_v3   ;;  %v318_v47 = vpop.permute.xlu0 %317 }
  0xad   : > { %v1935_v48 = vmul.f32 %v1901_v30, %v318_v47 }
  0xae   : > { %798 = vperm.xlu0 %1622, %v1815_v13  }
  0xb0   : > { %690 = vperm.xlu1 %1601, %v1807_v11  }
  0xb1   : > { %v1940_v50 = vpop.permute.xlu1 %350  ;;  %v1942_v51 = vpop.permute.xlu0 %346 }
  0xb2   : > { %770 = vperm.xlu0 %1622, %v1794_v8  }
  0xb4   : > { %1602 = vset.pattern.permute.xlu1 %v2486_v39 }
  0xb5   : > { %v355_v53 = vpop.permute.xlu1 %354  ;;  %882 = vperm.xlu1 %1602, %v1799_v9   ;;  %v359_v54 = vpop.permute.xlu0 %358 }
  0xb6   : > { %v415_v57 = vmul.f32 %v1946_v52, %v355_v53  ;;  %v416_v58 = vmul.f32 %v1946_v52, %v359_v54  ;;  %1627 = vset.pattern.permute.xlu0 %v2486_v39  ;;  %v340_v53 = vmul.f32 %v1901_v30, %v303_v40  ;;  %v342_v40 = vmul.f32 %v1901_v30, %v1924_v43 }
  0xb7   : > { %850 = vperm.xlu0 %1627, %v1778_v4   ;;  %v344_v43 = vmul.f32 %v1901_v30, %v1931_v46  ;;  %v1164_v46 = vld [vmem:[%s2483_s3] sm:$0xff] }
  0xb8   : > { %v1956_v59 = vadd.f32 %v415_v57, %v331_v55  ;;  %v1958_v60 = vadd.f32 %v416_v58, %v332_v56 }
  0xb9   : > { %v363_v61 = vpop.permute.xlu1 %362  ;;  %1603 = vset.pattern.permute.xlu1 %v1713_v19  ;;  %v367_v62 = vpop.permute.xlu0 %366 }
  0xba   : > { %v417_v0 = vmul.f32 %v1946_v52, %v363_v61  ;;  %v418_v17 = vmul.f32 %v1946_v52, %v367_v62  ;;  %562 = vperm.xlu1 %1603, %v1786_v6  }
  0xbb   : > { %886 = vperm.xlu0 %1627, %v1810_v12  }
  0xbc   : > { %v1966_v22 = vadd.f32 %v417_v0, %v333_v33  ;;  %v1968_v24 = vadd.f32 %v418_v17, %v334_v63 }
  0xbd   : > { %v371_v26 = vpop.permute.xlu1 %370  ;;  %v375_v28 = vpop.permute.xlu0 %374 }
  0xbe   : > { %v419_v35 = vmul.f32 %v1946_v52, %v371_v26  ;;  %v420_v31 = vmul.f32 %v1946_v52, %v375_v28  ;;  %1604 = vset.pattern.permute.xlu1 %v1715_v21 }
  0xbf   : > { %754 = vperm.xlu1 %1604, %v1767_v1   ;;  %894 = vperm.xlu0 %1627, %v1818_v14  }
  0xc0   : > { %v1976_v41 = vadd.f32 %v419_v35, %v335_v36  ;;  %v1978_v33 = vadd.f32 %v420_v31, %v336_v32  ;;  %v1717_v36 = vmov 7   ;;  %v511_v32 = vsub.s32 2, %v1884_v23  ;;  %v1165_v35 = vld [vmem:[%s2483_s3 + $0x8] sm:$0xff] }
  0xc1   : > { %v1980_v44 = vpop.permute.xlu1 %378  ;;  %v1982_v47 = vpop.permute.xlu0 %382 }
  0xc3   : > { %786 = vperm.xlu1 %1604, %v1810_v12   ;;  %866 = vperm.xlu0 %1627, %v1783_v5  }
  0xc5   : > { %v387_v34 = vpop.permute.xlu1 %386  ;;  %v391_v49 = vpop.permute.xlu0 %390 }
  0xc6   : > { %v423_v54 = vmul.f32 %v1946_v52, %v387_v34  ;;  %v424_v55 = vmul.f32 %v1946_v52, %v391_v49  ;;  %v1522_v34 = vpack.c.bf16 %v1165_v35, %v1164_v46  ;;  %v1166_v49 = vld [vmem:[%s2483_s3 + $0x10] sm:$0xff] }
  0xc7   : > { %1605 = vset.pattern.permute.xlu1 %v1717_v36  ;;  %870 = vperm.xlu0 %1627, %v1794_v8  }
  0xc8   : > { %v1992_v56 = vadd.f32 %v423_v54, %v1920_v42  ;;  %v1994_v57 = vadd.f32 %v424_v55, %v340_v53  ;;  %978 = vperm.xlu1 %1605, %v1802_v10   ;;  %1523 = vmatprep.subr.bf16.mxu0 %v1522_v34  ;;  %v1167_v53 = vld [vmem:[%s2483_s3 + $0x18] sm:$0xff] }
  0xc9   : > { %v395_v58 = vpop.permute.xlu1 %394  ;;  %v399_v61 = vpop.permute.xlu0 %398  ;;  %1525 = vmatpush3.bf16.msra.mxu0 %v1522_v34  ;;  %1554 = vmatprep.subr.bf16.mxu1 %v1522_v34 }
  0xca   : > { %v425_v62 = vmul.f32 %v1946_v52, %v395_v58  ;;  %v426_v63 = vmul.f32 %v1946_v52, %v399_v61  ;;  %1562 = vmatpush3.bf16.msra.mxu1 %v1522_v34 }
  0xcb   : > { %906 = vperm.xlu0 %1627, %v1823_v15  }
  0xcc   : > { %v2003_v8 = vadd.f32 %v425_v62, %v1927_v45  ;;  %v2005_v42 = vadd.f32 %v426_v63, %v342_v40  ;;  %1606 = vset.pattern.permute.xlu1 %v1713_v19  ;;  %v1168_v40 = vld [vmem:[%s2483_s3 + $0x20] sm:$0xff]  ;;  %v1169_v62 = vld [vmem:[%s2483_s3 + $0x28] sm:$0xff] }
  0xcd   : > { %v403_v0 = vpop.permute.xlu1 %402  ;;  %566 = vperm.xlu1 %1606, %v1783_v5   ;;  %v407_v10 = vpop.permute.xlu0 %406 }
  0xce   : > { %v427_v17 = vmul.f32 %v1946_v52, %v403_v0  ;;  %v428_v26 = vmul.f32 %v1946_v52, %v407_v10  ;;  %v1530_v10 = vpack.c.bf16 %v1169_v62, %v1168_v40 }
  0xcf   : > { %1633 = vset.pattern.permute.xlu0 %v1717_v36 }
  0xd0   : > { %v2015_v45 = vadd.f32 %v427_v17, %v1935_v48  ;;  %v2017_v28 = vadd.f32 %v428_v26, %v344_v43  ;;  %946 = vperm.xlu0 %1633, %v1770_v2   ;;  %v2035_v2 = vrot.slane %v1894_v27, %v511_v32  ;;  %v421_v43 = vmul.f32 %v1946_v52, %v1980_v44  ;;  %v1170_v32 = vld [vmem:[%s2483_s3 + $0x30] sm:$0xff] }
  0xd1   : > { %1607 = vset.pattern.permute.xlu1 %v1715_v21 }
  0xd2   : > { %758 = vperm.xlu1 %1607, %v1775_v3   ;;  %v2029_v48 = vpop.permute.xlu1 %446  ;;  %v2031_v31 = vpop.permute.xlu0 %450 }
  0xd4   : > { %950 = vperm.xlu0 %1633, %v1778_v4   ;;  %v1526_v4 = vpack.c.bf16 %v1167_v53, %v1166_v49  ;;  %v1172_v49 = vld [vmem:[%s2483_s3 + $0x40] sm:$0xff]  ;;  %v1173_v53 = vld [vmem:[%s2483_s3 + $0x48] sm:$0xff] }
  0xd6   : > { %790 = vperm.xlu1 %1607, %v1807_v11   ;;  %v2044_v54 = vpop.permute.xlu1 %454  ;;  %v463_v55 = vpop.permute.xlu0 %462  ;;  %1527 = vmatprep.subr.bf16.mxu0 %v1526_v4 }
  0xd7   : > { %v517_v58 = vmul.f32 %v2035_v2, %v463_v55  ;;  %1529 = vmatpush3.bf16.msra.mxu0 %v1526_v4  ;;  %1555 = vmatprep.subr.bf16.mxu1 %v1526_v4 }
  0xd8   : > { %994 = vperm.xlu0 %1633, %v1818_v14   ;;  %1563 = vmatpush3.bf16.msra.mxu1 %v1526_v4 }
  0xd9   : > { %v2049_v61 = vadd.f32 %v517_v58, %v1966_v22  ;;  %v337_v22 = vmul.f32 %v1901_v30, %v1913_v38  ;;  %1531 = vmatprep.subr.bf16.mxu0 %v1530_v10  ;;  %v1171_v38 = vld [vmem:[%s2483_s3 + $0x38] sm:$0xff]  ;;  %1556 = vmatprep.subr.bf16.mxu1 %v1530_v10  ;;  %v1538_v58 = vpack.c.bf16 %v1173_v53, %v1172_v49 }
  0xda   : > { %1608 = vset.pattern.permute.xlu1 %v1717_v36  ;;  %v2058_v63 = vpop.permute.xlu1 %458  ;;  %v471_v0 = vpop.permute.xlu0 %470 }
  0xdb   : > { %v519_v17 = vmul.f32 %v2035_v2, %v471_v0  ;;  %982 = vperm.xlu1 %1608, %v1799_v9   ;;  %1533 = vmatpush3.bf16.msra.mxu0 %v1530_v10  ;;  %v1534_v9 = vpack.c.bf16 %v1171_v38, %v1170_v32  ;;  %v437_v35 = vadd.f32 %v421_v43, %v337_v22  ;;  %v1174_v0 = vld [vmem:[%s2483_s3 + $0x50] sm:$0xff]  ;;  %v1176_v38 = vld [vmem:[%s2483_s3 + $0x60] sm:$0xff] }
  0xdc   : > { %966 = vperm.xlu0 %1633, %v1783_v5   ;;  %1564 = vmatpush3.bf16.msra.mxu1 %v1530_v10  ;;  %v1175_v10 = vld [vmem:[%s2483_s3 + $0x58] sm:$0xff] }
  0xdd   : > { %v2068_v26 = vadd.f32 %v519_v17, %v1976_v41  ;;  %1535 = vmatprep.subr.bf16.mxu0 %v1534_v9  ;;  %1557 = vmatprep.subr.bf16.mxu1 %v1534_v9  ;;  %v1542_v17 = vpack.c.bf16 %v1175_v10, %v1174_v0 }
  0xde   : > { %v2076_v44 = vpop.permute.xlu1 %466  ;;  %v479_v46 = vpop.permute.xlu0 %478 }
  0xdf   : > { %v521_v34 = vmul.f32 %v2035_v2, %v479_v46  ;;  %1609 = vset.pattern.permute.xlu1 %v1712_v18  ;;  %1537 = vmatpush3.bf16.msra.mxu0 %v1534_v9  ;;  %v1177_v46 = vld [vmem:[%s2483_s3 + $0x68] sm:$0xff] }
  0xe0   : > { %502 = vperm.xlu1 %1609, %v1826_v16   ;;  %1002 = vperm.xlu0 %1633, %v1826_v16  }
  0xe1   : > { %v537_v41 = vadd.f32 %v521_v34, %v437_v35  ;;  %1565 = vmatpush3.bf16.msra.mxu1 %v1534_v9  ;;  %1539 = vmatprep.subr.bf16.mxu0 %v1538_v58  ;;  %v1546_v34 = vpack.c.bf16 %v1177_v46, %v1176_v38 }
  0xe2   : > { %v2088_v55 = vpop.permute.xlu1 %474  ;;  %v487_v4 = vpop.permute.xlu0 %486  ;;  %1558 = vmatprep.subr.bf16.mxu1 %v1538_v58 }
  0xe3   : > { %v523_v40 = vmul.f32 %v2035_v2, %v487_v4  ;;  %1541 = vmatpush3.bf16.msra.mxu0 %v1538_v58  ;;  %v1178_v4 = vld [vmem:[%s2483_s3 + $0x70] sm:$0xff] }
  0xe4   : > { %1610 = vset.pattern.permute.xlu1 %v1714_v20  ;;  %1543 = vmatprep.subr.bf16.mxu0 %v1542_v17 }
  0xe5   : > { %v539_v62 = vadd.f32 %v523_v40, %v1992_v56  ;;  %694 = vperm.xlu1 %1610, %v1818_v14   ;;  %1566 = vmatpush3.bf16.msra.mxu1 %v1538_v58  ;;  %v611_v56 = vsub.s32 3, %v1884_v23  ;;  %v1179_v58 = vld [vmem:[%s2483_s3 + $0x78] sm:$0xff] }
  0xe6   : > { %v2100_v22 = vpop.permute.xlu1 %482  ;;  %v495_v43 = vpop.permute.xlu0 %494  ;;  %1559 = vmatprep.subr.bf16.mxu1 %v1542_v17  ;;  %v1550_v40 = vpack.c.bf16 %v1179_v58, %v1178_v4 }
  0xe7   : > { %v525_v32 = vmul.f32 %v2035_v2, %v495_v43  ;;  %1545 = vmatpush3.bf16.msra.mxu0 %v1542_v17 }
  0xe8   : > { %1547 = vmatprep.subr.bf16.mxu0 %v1546_v34 }
  0xe9   : > { %v541_v14 = vadd.f32 %v525_v32, %v2003_v8  ;;  %1611 = vset.pattern.permute.xlu1 %v2486_v39  ;;  %1567 = vmatpush3.bf16.msra.mxu1 %v1542_v17  ;;  %v2117_v8 = vrot.slane %v1894_v27, %v611_v56  ;;  %v516_v32 = vmul.f32 %v2035_v2, %v2058_v63 }
  0xea   : > { %854 = vperm.xlu1 %1611, %v1767_v1   ;;  %v2113_v9 = vpop.permute.xlu1 %490  ;;  %v499_v35 = vpop.permute.xlu0 %498  ;;  %1560 = vmatprep.subr.bf16.mxu1 %v1546_v34 }
  0xeb   : > { %v526_v49 = vmul.f32 %v2035_v2, %v499_v35  ;;  %1549 = vmatpush3.bf16.msra.mxu0 %v1546_v34 }
  0xec   : > { %1551 = vmatprep.subr.bf16.mxu0 %v1550_v40 }
  0xed   : > { %v542_v53 = vadd.f32 %v526_v49, %v2005_v42  ;;  %1568 = vmatpush3.bf16.msra.mxu1 %v1546_v34 }
  0xee   : > { %1612 = vset.pattern.permute.xlu1 %v1712_v18  ;;  %1561 = vmatprep.subr.bf16.mxu1 %v1550_v40 }
  0xef   : > { %506 = vperm.xlu1 %1612, %v1823_v15   ;;  %v2128_v0 = vpop.permute.xlu1 %546  ;;  %v579_v10 = vpop.permute.xlu0 %578  ;;  %1553 = vmatpush3.bf16.msra.mxu0 %v1550_v40 }
  0xf0   : > { %v621_v42 = vmul.f32 %v2117_v8, %v579_v10 }
  0xf1   : > { %1569 = vmatpush3.bf16.msra.mxu1 %v1550_v40 }
  0xf2   : > { %v2131_v43 = vadd.f32 %v621_v42, %v537_v41  ;;  %v532_v41 = vadd.f32 %v516_v32, %v1958_v60  ;;  %v515_v42 = vmul.f32 %v2035_v2, %v2044_v54 }
  0xf3   : > { %1613 = vset.pattern.permute.xlu1 %v1714_v20  ;;  %v2134_v17 = vpop.permute.xlu1 %550  ;;  %v587_v18 = vpop.permute.xlu0 %586 }
  0xf4   : > { %v623_v56 = vmul.f32 %v2117_v8, %v587_v18  ;;  %666 = vperm.xlu1 %1613, %v1783_v5  }
  0xf6   : > { %v639_v38 = vadd.f32 %v623_v56, %v539_v62  ;;  %v520_v56 = vmul.f32 %v2035_v2, %v2088_v55  ;;  %v422_v55 = vmul.f32 %v1946_v52, %v1982_v47 }
  0xf7   : > { %v583_v46 = vpop.permute.xlu1 %582  ;;  %v559_v35 = vpop.permute.xlu0 %558 }
  0xf8   : > { %v616_v34 = vmul.f32 %v2117_v8, %v559_v35  ;;  %1614 = vset.pattern.permute.xlu1 %v2486_v39  ;;  %v622_v47 = vmul.f32 %v2117_v8, %v583_v46 }
  0xf9   : > { %858 = vperm.xlu1 %1614, %v1775_v3  }
  0xfa   : > { %v2144_v49 = vadd.f32 %v616_v34, %v532_v41  ;;  %v531_v41 = vadd.f32 %v515_v42, %v1956_v59  ;;  %v522_v42 = vmul.f32 %v2035_v2, %v2100_v22 }
  0xfb   : > { %v595_v4 = vpop.permute.xlu0 %594 }
  0xfc   : > { %v625_v63 = vmul.f32 %v2117_v8, %v595_v4  ;;  %v2147_v58 = vpop.permute.xlu1 %678 }
  0xfd   : > { %890 = vperm.xlu1 %1614, %v1807_v11  }
  0xfe   : > { %v2150_v62 = vadd.f32 %v625_v63, %v541_v14 }
  0xff   : > { %v599_v40 = vpop.permute.xlu0 %598 }
 0x100   : > { %v626_v60 = vmul.f32 %v2117_v8, %v599_v40  ;;  %v2153_v10 = vpop.permute.xlu1 %650 }
 0x101   : > { %1615 = vset.pattern.permute.xlu1 %v1713_v19 }
 0x102   : > { %v642_v18 = vadd.f32 %v626_v60, %v542_v53  ;;  %602 = vperm.xlu1 %1615, %v1826_v16   ;;  %v536_v53 = vadd.f32 %v520_v56, %v1978_v33 }
 0x103   : > { %v571_v32 = vpop.permute.xlu0 %570 }
 0x104   : > { %v619_v14 = vmul.f32 %v2117_v8, %v571_v32  ;;  %v711_v32 = vsub.s32 4, %v1884_v23 }
 0x105   : > { %v555_v35 = vpop.permute.xlu1 %554 }
 0x106   : > { %v635_v34 = vadd.f32 %v619_v14, %v2068_v26  ;;  %v615_v4 = vmul.f32 %v2117_v8, %v555_v35  ;;  %1616 = vset.pattern.permute.xlu1 %v1715_v21  ;;  %v338_v26 = vmul.f32 %v1901_v30, %v1911_v37  ;;  %v524_v37 = vmul.f32 %v2035_v2, %v2113_v9 }
 0x107   : > { %762 = vperm.xlu1 %1616, %v1786_v6   ;;  %v575_v54 = vpop.permute.xlu0 %574 }
 0x108   : > { %v631_v63 = vadd.f32 %v615_v4, %v531_v41  ;;  %v620_v40 = vmul.f32 %v2117_v8, %v575_v54  ;;  %v438_v56 = vadd.f32 %v422_v55, %v338_v26  ;;  %v2188_v41 = vrot.slane %v1894_v27, %v711_v32 }
 0x109   : > { %v540_v46 = vadd.f32 %v524_v37, %v1994_v57 }
 0x10a   : > { %v2171_v60 = vadd.f32 %v620_v40, %v536_v53  ;;  %v2173_v59 = vpop.permute.xlu1 %746  ;;  %v538_v35 = vadd.f32 %v522_v42, %v438_v56 }
 0x10b   : > { %1617 = vset.pattern.permute.xlu1 %v1717_v36 }
 0x10c   : > { %954 = vperm.xlu1 %1617, %v1767_v1   ;;  %v2182_v33 = vpop.permute.xlu0 %646  ;;  %v638_v4 = vadd.f32 %v622_v47, %v538_v35 }
 0x10e   : > { %v2185_v14 = vpop.permute.xlu1 %778 }
 0x110   : > { %986 = vperm.xlu1 %1617, %v1810_v12   ;;  %v683_v22 = vpop.permute.xlu0 %682 }
 0x111   : > { %v722_v1 = vmul.f32 %v2188_v41, %v683_v22 }
 0x113   : > { %v2194_v54 = vadd.f32 %v722_v1, %v638_v4  ;;  %v591_v53 = vpop.permute.xlu1 %590 }
 0x114   : > { %v624_v40 = vmul.f32 %v2117_v8, %v591_v53  ;;  %1619 = vset.pattern.permute.xlu1 %v1713_v19  ;;  %v687_v55 = vpop.permute.xlu0 %686 }
 0x115   : > { %v723_v26 = vmul.f32 %v2188_v41, %v687_v55  ;;  %606 = vperm.xlu1 %1619, %v1823_v15  }
 0x116   : > { %v640_v9 = vadd.f32 %v624_v40, %v540_v46  ;;  %v811_v46 = vsub.s32 5, %v1884_v23 }
 0x117   : > { %v2201_v12 = vadd.f32 %v723_v26, %v639_v38 }
 0x118   : > { %v2203_v42 = vpop.permute.xlu1 %782  ;;  %v663_v32 = vpop.permute.xlu0 %662 }
 0x119   : > { %1620 = vset.pattern.permute.xlu1 %v1715_v21 }
 0x11a   : > { %766 = vperm.xlu1 %1620, %v1783_v5  }
 0x11c   : > { %v699_v57 = vpop.permute.xlu0 %698 }
 0x11d   : > { %v726_v56 = vmul.f32 %v2188_v41, %v699_v57  ;;  %v655_v47 = vpop.permute.xlu1 %654 }
 0x11e   : > { %v715_v19 = vmul.f32 %v2188_v41, %v655_v47  ;;  %1621 = vset.pattern.permute.xlu1 %v1717_v36 }
 0x11f   : > { %v742_v35 = vadd.f32 %v726_v56, %v642_v18  ;;  %958 = vperm.xlu1 %1621, %v1775_v3  }
 0x120   : > { %v731_v38 = vadd.f32 %v715_v19, %v631_v63  ;;  %v671_v37 = vpop.permute.xlu0 %670  ;;  %v2223_v63 = vrot.slane %v1894_v27, %v811_v46 }
 0x121   : > { %v719_v22 = vmul.f32 %v2188_v41, %v671_v37 }
 0x122   : > { %v2212_v4 = vpop.permute.xlu1 %846 }
 0x123   : > { %v735_v1 = vadd.f32 %v719_v22, %v635_v34  ;;  %990 = vperm.xlu1 %1621, %v1807_v11  }
 0x125   : > { %v2215_v5 = vpop.permute.xlu0 %750 }
 0x126   : > { %v879_v53 = vpop.permute.xlu1 %878 }
 0x127   : > { %1623 = vset.pattern.permute.xlu1 %v1714_v20 }
 0x128   : > { %702 = vperm.xlu1 %1623, %v1826_v16  }
 0x129   : > { %v2220_v18 = vpop.permute.xlu0 %794 }
 0x12b   : > { %v659_v3 = vpop.permute.xlu1 %658 }
 0x12c   : > { %v716_v40 = vmul.f32 %v2188_v41, %v659_v3  ;;  %1624 = vset.pattern.permute.xlu1 %v2486_v39  ;;  %v717_v3 = vmul.f32 %v2188_v41, %v663_v32 }
 0x12d   : > { %862 = vperm.xlu1 %1624, %v1786_v6   ;;  %v799_v11 = vpop.permute.xlu0 %798 }
 0x12e   : > { %v2229_v34 = vadd.f32 %v716_v40, %v2144_v49  ;;  %v826_v55 = vmul.f32 %v2223_v63, %v799_v11  ;;  %v329_v11 = vmul.f32 %v1901_v30, %v1886_v25 }
 0x12f   : > { %v691_v26 = vpop.permute.xlu1 %690 }
 0x130   : > { %v2232_v57 = vadd.f32 %v826_v55, %v742_v35  ;;  %v724_v56 = vmul.f32 %v2188_v41, %v691_v26  ;;  %v413_v55 = vmul.f32 %v1946_v52, %v1942_v51 }
 0x131   : > { %1625 = vset.pattern.permute.xlu1 %v1714_v20  ;;  %v771_v47 = vpop.permute.xlu0 %770 }
 0x132   : > { %v2236_v19 = vadd.f32 %v724_v56, %v640_v9  ;;  %v819_v37 = vmul.f32 %v2223_v63, %v771_v47  ;;  %674 = vperm.xlu1 %1625, %v1791_v7  }
 0x134   : > { %v835_v22 = vadd.f32 %v819_v37, %v735_v1  ;;  %v2240_v46 = vpop.permute.xlu1 %882  ;;  %v911_v1 = vsub.s32 6, %v1884_v23  ;;  %v1011_v37 = vsub.s32 7, %v1884_v23  ;;  %v613_v23 = vmul.f32 %v2117_v8, %v2128_v0 }
 0x136   : > { %706 = vperm.xlu1 %1625, %v1823_v15   ;;  %v2243_v49 = vpop.permute.xlu0 %850  ;;  %v2266_v25 = vrot.slane %v1894_v27, %v911_v1 }
 0x138   : > { %v921_v1 = vmul.f32 %v2266_v25, %v879_v53 }
 0x139   : > { %v563_v35 = vpop.permute.xlu1 %562 }
 0x13a   : > { %v617_v40 = vmul.f32 %v2117_v8, %v563_v35  ;;  %1626 = vset.pattern.permute.xlu1 %v2486_v39  ;;  %v887_v20 = vpop.permute.xlu0 %886  ;;  %v429_v35 = vadd.f32 %v413_v55, %v329_v11 }
 0x13b   : > { %898 = vperm.xlu1 %1626, %v1815_v13  }
 0x13c   : > { %v633_v9 = vadd.f32 %v617_v40, %v2049_v61  ;;  %v721_v61 = vmul.f32 %v2188_v41, %v2147_v58  ;;  %v821_v40 = vmul.f32 %v2223_v63, %v2185_v14  ;;  %v923_v58 = vmul.f32 %v2266_v25, %v887_v20 }
 0x13d   : > { %v330_v14 = vmul.f32 %v1901_v30, %v1897_v29  ;;  %v414_v20 = vmul.f32 %v1946_v52, %v1940_v50 }
 0x13e   : > { %v755_v26 = vpop.permute.xlu1 %754  ;;  %v2255_v56 = vpop.permute.xlu0 %894  ;;  %v2257_v32 = vadd.f32 %v717_v3, %v633_v9  ;;  %v513_v3 = vmul.f32 %v2035_v2, %v2029_v48  ;;  %v2284_v48 = vrot.slane %v1894_v27, %v1011_v37  ;;  %v514_v27 = vmul.f32 %v2035_v2, %v2031_v31  ;;  %v2309_v31 = vld [vmem:[%s2482_s2] ss:$0 sm:$0xff] }
 0x13f   : > { %v815_v47 = vmul.f32 %v2223_v63, %v755_v26  ;;  %1628 = vset.pattern.permute.xlu1 %v1715_v21  ;;  %v430_v52 = vadd.f32 %v414_v20, %v330_v14 }
 0x140   : > { %802 = vperm.xlu1 %1628, %v1826_v16   ;;  %v529_v0 = vadd.f32 %v513_v3, %v429_v35 }
 0x141   : > { %v2268_v51 = vadd.f32 %v815_v47, %v731_v38  ;;  %v737_v38 = vadd.f32 %v721_v61, %v2131_v43  ;;  %v713_v43 = vmul.f32 %v2188_v41, %v2182_v33  ;;  %v614_v33 = vmul.f32 %v2117_v8, %v2134_v17 }
 0x142   : > { %v787_v9 = vpop.permute.xlu1 %786  ;;  %v2274_v26 = vpop.permute.xlu0 %866  ;;  %v629_v30 = vadd.f32 %v613_v23, %v529_v0  ;;  %v813_v17 = vmul.f32 %v2223_v63, %v2173_v59 }
 0x143   : > { %v823_v39 = vmul.f32 %v2223_v63, %v787_v9  ;;  %v837_v53 = vadd.f32 %v821_v40, %v737_v38  ;;  %v530_v40 = vadd.f32 %v514_v27, %v430_v52 }
 0x144   : > { %1629 = vset.pattern.permute.xlu1 %v1717_v36  ;;  %v729_v37 = vadd.f32 %v713_v43, %v629_v30 }
 0x145   : > { %v839_v11 = vadd.f32 %v823_v39, %v2201_v12  ;;  %962 = vperm.xlu1 %1629, %v1786_v6   ;;  %v937_v50 = vadd.f32 %v921_v1, %v837_v53  ;;  %v518_v6 = vmul.f32 %v2035_v2, %v2076_v44  ;;  %v714_v44 = vmul.f32 %v2188_v41, %v2153_v10 }
 0x146   : > { %v871_v55 = vpop.permute.xlu0 %870  ;;  %v630_v23 = vadd.f32 %v614_v33, %v530_v40  ;;  %v829_v38 = vadd.f32 %v813_v17, %v729_v37  ;;  %v814_v1 = vmul.f32 %v2223_v63, %v2215_v5 }
 0x147   : > { %v919_v47 = vmul.f32 %v2266_v25, %v871_v55  ;;  %v979_v61 = vpop.permute.xlu1 %978  ;;  %v2297_v29 = vadd.f32 %v923_v58, %v839_v11  ;;  %v914_v11 = vmul.f32 %v2266_v25, %v2243_v49 }
 0x148   : > { %v1021_v39 = vmul.f32 %v2284_v48, %v979_v61  ;;  %v730_v10 = vadd.f32 %v714_v44, %v630_v23  ;;  %v822_v61 = vmul.f32 %v2223_v63, %v2203_v42 }
 0x149   : > { %v2304_v12 = vadd.f32 %v919_v47, %v835_v22  ;;  %1630 = vset.pattern.permute.xlu1 %v1715_v21  ;;  %v913_v22 = vmul.f32 %v2266_v25, %v2212_v4  ;;  %v534_v21 = vadd.f32 %v518_v6, %v1968_v24  ;;  %v2487_v6 = vmov 6  }
 0x14a   : > { %v1037_v35 = vadd.f32 %v1021_v39, %v937_v50  ;;  %774 = vperm.xlu1 %1630, %v1791_v7   ;;  %v2313_v3 = vpop.permute.xlu0 %906  ;;  %v830_v43 = vadd.f32 %v814_v1, %v730_v10  ;;  %v838_v42 = vadd.f32 %v822_v61, %v2194_v54 }
 0x14b   : > { %v929_v4 = vadd.f32 %v913_v22, %v829_v38  ;;  %v1699_v22 = vld [vmem:[%s1764_s24 + $0x38] sm:$0xff] }
 0x14c   : > { %v1060_v9 = vadd.f32 %v2309_v31, %v1037_v35  ;;  %v567_v58 = vpop.permute.xlu1 %566  ;;  %v930_v5 = vadd.f32 %v914_v11, %v830_v43 }
 0x14d   : > { %v618_v7 = vmul.f32 %v2117_v8, %v567_v58 }
 0x14e   : > { %v1423_v14 = vmul.f32 -1.442695, %v1060_v9  ;;  %806 = vperm.xlu1 %1630, %v1823_v15  }
 0x14f   : > { %v2327_v59 = vadd.f32 %v618_v7, %v534_v21  ;;  %v947_v20 = vpop.permute.xlu0 %946  ;;  %v1700_v21 = vld [vmem:[%s1764_s24 + $0x30] sm:$0xff] }
 0x150   : > { %v1013_v24 = vmul.f32 %v2284_v48, %v947_v20  ;;  %1635 = vpow2.f32 %v1423_v14  ;;  %v825_v14 = vmul.f32 %v2223_v63, %v2220_v18 }
 0x151   : > { %v759_v0 = vpop.permute.xlu1 %758 }
 0x152   : > { %v1029_v53 = vadd.f32 %v1013_v24, %v929_v4  ;;  %v816_v55 = vmul.f32 %v2223_v63, %v759_v0  ;;  %1631 = vset.pattern.permute.xlu1 %v1717_v36  ;;  %v1701_v0 = vld [vmem:[%s1764_s24 + $0x78] sm:$0xff] }
 0x153   : > { %998 = vperm.xlu1 %1631, %v1815_v13   ;;  %v951_v15 = vpop.permute.xlu0 %950  ;;  %v922_v13 = vmul.f32 %v2266_v25, %v2240_v46 }
 0x154   : > { %v1052_v27 = vadd.f32 %v2309_v31, %v1029_v53  ;;  %v2337_v47 = vadd.f32 %v816_v55, %v2229_v34  ;;  %v1014_v49 = vmul.f32 %v2284_v48, %v951_v15 }
 0x155   : > { %v791_v30 = vpop.permute.xlu1 %790  ;;  %v938_v44 = vadd.f32 %v922_v13, %v838_v42 }
 0x156   : > { %v1415_v50 = vmul.f32 -1.442695, %v1052_v27  ;;  %v1030_v39 = vadd.f32 %v1014_v49, %v930_v5  ;;  %v824_v52 = vmul.f32 %v2223_v63, %v791_v30 }
 0x157   : > { %1632 = vset.pattern.permute.xlu1 %v2487_v6 }
 0x158   : > { %v1053_v33 = vadd.f32 %v2309_v31, %v1030_v39  ;;  %v2348_v34 = vadd.f32 %v824_v52, %v2236_v19  ;;  %902 = vperm.xlu1 %1632, %v1826_v16   ;;  %1637 = vpow2.f32 %v1415_v50 }
 0x15a   : > { %v1636_v37 = vpop.eup %1635  ;;  %v1416_v35 = vmul.f32 -1.442695, %v1053_v33  ;;  %v983_v40 = vpop.permute.xlu1 %982 }
 0x15b   : > { %v1022_v17 = vmul.f32 %v2284_v48, %v983_v40  ;;  %v1124_v46 = vadd.f32 1.0, %v1636_v37 }
 0x15c   : > { %1639 = vpow2.f32 %v1416_v35  ;;  %874 = vperm.xlu1 %1632, %v1699_v22  }
 0x15d   : > { %v1038_v9 = vadd.f32 %v1022_v17, %v938_v44  ;;  %1641 = vrcp.f32 %v1124_v46 }
 0x15f   : > { %v1061_v19 = vadd.f32 %v2309_v31, %v1038_v9  ;;  %v503_v58 = vpop.permute.xlu1 %502 }
 0x160   : > { %v527_v16 = vmul.f32 %v2035_v2, %v503_v58  ;;  %1634 = vset.pattern.permute.xlu1 %v1717_v36  ;;  %v925_v36 = vmul.f32 %v2266_v25, %v2255_v56  ;;  %v995_v58 = vpop.permute.xlu0 %994 }
 0x161   : > { %v1424_v54 = vmul.f32 -1.442695, %v1061_v19  ;;  %970 = vperm.xlu1 %1634, %v1700_v21   ;;  %v1025_v21 = vmul.f32 %v2284_v48, %v995_v58 }
 0x162   : > { %v1638_v23 = vpop.eup %1637  ;;  %v543_v7 = vadd.f32 %v527_v16, %v2015_v45 }
 0x163   : > { %1643 = vpow2.f32 %v1424_v54  ;;  %v1116_v38 = vadd.f32 1.0, %v1638_v23 }
 0x164   : > { %v695_v1 = vpop.permute.xlu1 %694 }
 0x165   : > { %v725_v10 = vmul.f32 %v2188_v41, %v695_v1  ;;  %974 = vperm.xlu1 %1634, %v1699_v22   ;;  %1645 = vrcp.f32 %v1116_v38 }
 0x166   : > { %v1640_v20 = vpop.eup %1639 }
 0x167   : > { %v1642_v4 = vpop.eup %1641  ;;  %v1117_v11 = vadd.f32 1.0, %v1640_v20  ;;  %v741_v24 = vadd.f32 %v725_v10, %v2150_v62 }
 0x168   : > { %1510 = vmatprep.mubr.f32.mxu1 %v1642_v4 }
 0x169   : > { %1647 = vrcp.f32 %v1117_v11  ;;  %v841_v45 = vadd.f32 %v825_v14, %v741_v24  ;;  %1006 = vperm.xlu1 %1634, %v1701_v0   ;;  %v855_v43 = vpop.permute.xlu1 %854 }
 0x16b   : > { %v941_v53 = vadd.f32 %v925_v36, %v841_v45 }
 0x16d   : > { %v1644_v18 = vpop.eup %1643  ;;  %v1041_v1 = vadd.f32 %v1025_v21, %v941_v53 }
 0x16e   : > { %v1125_v55 = vadd.f32 1.0, %v1644_v18  ;;  %v507_v15 = vpop.permute.xlu1 %506 }
 0x16f   : > { %v1646_v5 = vpop.eup %1645  ;;  %v528_v27 = vmul.f32 %v2035_v2, %v507_v15  ;;  %v1064_v45 = vadd.f32 %v2309_v31, %v1041_v1 }
 0x170   : > { %1649 = vrcp.f32 %v1125_v55  ;;  %1498 = vmatprep.mubr.f32.mxu0 %v1646_v5 }
 0x171   : > { %v544_v56 = vadd.f32 %v528_v27, %v2017_v28  ;;  %v915_v28 = vmul.f32 %v2266_v25, %v855_v43  ;;  %v1427_v5 = vmul.f32 -1.442695, %v1064_v45 }
 0x173   : > { %v1648_v49 = vpop.eup %1647  ;;  %v667_v61 = vpop.permute.xlu1 %666  ;;  %v931_v37 = vadd.f32 %v915_v28, %v2268_v51 }
 0x174   : > { %v718_v62 = vmul.f32 %v2188_v41, %v667_v61  ;;  %1499 = vmatmul.mubr.f32.vlgmr.msra.gmra.mrb[0].mxu0 %v1648_v49 }
 0x176   : > { %v734_v30 = vadd.f32 %v718_v62, %v2327_v59 }
 0x178   : > { %v859_v50 = vpop.permute.xlu1 %858 }
 0x17a   : > { %v1650_v39 = vpop.eup %1649 }
 0x17b   : > { %1511 = vmatmul.mubr.f32.vlgmr.msra.gmra.mrb[0].mxu1 %v1650_v39 }
 0x17c   : > { %v891_v52 = vpop.permute.xlu1 %890 }
 0x17d   : > { %v924_v36 = vmul.f32 %v2266_v25, %v891_v52 }
 0x17f   : > { %v940_v18 = vadd.f32 %v924_v36, %v2348_v34  ;;  %v928_v36 = vmul.f32 %v2266_v25, %v2313_v3 }
 0x181   : > { %v603_v13 = vpop.permute.xlu1 %602 }
 0x182   : > { %v627_v6 = vmul.f32 %v2117_v8, %v603_v13 }
 0x184   : > { %v2371_v33 = vadd.f32 %v627_v6, %v543_v7  ;;  %v918_v7 = vmul.f32 %v2266_v25, %v2274_v26 }
 0x186   : > { %v2373_v2 = vpop.permute.xlu1 %762 }
 0x18b   : > { %v955_v42 = vpop.permute.xlu1 %954 }
 0x18c   : > { %v1015_v35 = vmul.f32 %v2284_v48, %v955_v42  ;;  %v967_v42 = vpop.permute.xlu0 %966 }
 0x18e   : > { %v1031_v40 = vadd.f32 %v1015_v35, %v931_v37 }
 0x18f   : > { %v987_v59 = vpop.permute.xlu1 %986 }
 0x190   : > { %v1054_v44 = vadd.f32 %v2309_v31, %v1031_v40  ;;  %v1023_v17 = vmul.f32 %v2284_v48, %v987_v59  ;;  %v1018_v40 = vmul.f32 %v2284_v48, %v967_v42 }
 0x192   : > { %v1417_v46 = vmul.f32 -1.442695, %v1054_v44  ;;  %v1039_v22 = vadd.f32 %v1023_v17, %v2297_v29  ;;  %v916_v29 = vmul.f32 %v2266_v25, %v859_v50 }
 0x194   : > { %1651 = vpow2.f32 %v1417_v46  ;;  %v1062_v9 = vadd.f32 %v2309_v31, %v1039_v22  ;;  %v607_v19 = vpop.permute.xlu1 %606  ;;  %v817_v46 = vmul.f32 %v2223_v63, %v2373_v2 }
 0x195   : > { %v628_v16 = vmul.f32 %v2117_v8, %v607_v19  ;;  %v932_v8 = vadd.f32 %v916_v29, %v2337_v47 }
 0x196   : > { %v1425_v54 = vmul.f32 -1.442695, %v1062_v9 }
 0x197   : > { %v2383_v51 = vadd.f32 %v628_v16, %v544_v56 }
 0x198   : > { %1653 = vpow2.f32 %v1425_v54  ;;  %v833_v54 = vadd.f32 %v817_v46, %v2257_v32 }
 0x199   : > { %v767_v23 = vpop.permute.xlu1 %766 }
 0x19a   : > { %v818_v38 = vmul.f32 %v2223_v63, %v767_v23 }
 0x19c   : > { %v834_v14 = vadd.f32 %v818_v38, %v734_v30 }
 0x19e   : > { %v1652_v10 = vpop.eup %1651  ;;  %v934_v20 = vadd.f32 %v918_v7, %v834_v14  ;;  %v959_v4 = vpop.permute.xlu1 %958 }
 0x19f   : > { %v1118_v11 = vadd.f32 1.0, %v1652_v10  ;;  %v1016_v24 = vmul.f32 %v2284_v48, %v959_v4 }
 0x1a0   : > { %v1034_v44 = vadd.f32 %v1018_v40, %v934_v20 }
 0x1a1   : > { %1655 = vrcp.f32 %v1118_v11  ;;  %v1032_v26 = vadd.f32 %v1016_v24, %v932_v8 }
 0x1a2   : > { %v1654_v0 = vpop.eup %1653  ;;  %v991_v43 = vpop.permute.xlu1 %990  ;;  %v1057_v9 = vadd.f32 %v2309_v31, %v1034_v44 }
 0x1a3   : > { %v1126_v53 = vadd.f32 1.0, %v1654_v0  ;;  %v1055_v55 = vadd.f32 %v2309_v31, %v1032_v26  ;;  %v1024_v15 = vmul.f32 %v2284_v48, %v991_v43 }
 0x1a4   : > { %v1420_v21 = vmul.f32 -1.442695, %v1057_v9 }
 0x1a5   : > { %1657 = vrcp.f32 %v1126_v53  ;;  %v1418_v47 = vmul.f32 -1.442695, %v1055_v55  ;;  %v1040_v27 = vadd.f32 %v1024_v15, %v940_v18 }
 0x1a7   : > { %1659 = vpow2.f32 %v1418_v47  ;;  %v1063_v56 = vadd.f32 %v2309_v31, %v1040_v27  ;;  %v703_v49 = vpop.permute.xlu1 %702  ;;  %v1003_v27 = vpop.permute.xlu0 %1002 }
 0x1a8   : > { %1661 = vpow2.f32 %v1427_v5  ;;  %v727_v45 = vmul.f32 %v2188_v41, %v703_v49 }
 0x1a9   : > { %v1426_v61 = vmul.f32 -1.442695, %v1063_v56 }
 0x1aa   : > { %v743_v15 = vadd.f32 %v727_v45, %v2371_v33 }
 0x1ab   : > { %v1656_v62 = vpop.eup %1655  ;;  %1663 = vpow2.f32 %v1426_v61 }
 0x1ac   : > { %v863_v30 = vpop.permute.xlu1 %862  ;;  %1501 = vmatprep.mubr.f32.mxu0 %v1656_v62 }
 0x1ad   : > { %v917_v19 = vmul.f32 %v2266_v25, %v863_v30  ;;  %v1027_v30 = vmul.f32 %v2284_v48, %v1003_v27 }
 0x1af   : > { %v1658_v34 = vpop.eup %1657  ;;  %v933_v7 = vadd.f32 %v917_v19, %v833_v54 }
 0x1b0   : > { %1513 = vmatprep.mubr.f32.mxu1 %v1658_v34 }
 0x1b1   : > { %v1660_v50 = vpop.eup %1659  ;;  %v2398_v39 = vpop.permute.xlu1 %674 }
 0x1b2   : > { %v1662_v52 = vpop.eup %1661  ;;  %v1119_v13 = vadd.f32 1.0, %v1660_v50  ;;  %v720_v33 = vmul.f32 %v2188_v41, %v2398_v39 }
 0x1b3   : > { %v1128_v28 = vadd.f32 1.0, %v1662_v52 }
 0x1b4   : > { %1665 = vrcp.f32 %v1119_v13  ;;  %v736_v42 = vadd.f32 %v720_v33, %v2171_v60 }
 0x1b5   : > { %v1664_v6 = vpop.eup %1663  ;;  %v707_v37 = vpop.permute.xlu1 %706 }
 0x1b6   : > { %v1127_v35 = vadd.f32 1.0, %v1664_v6  ;;  %v728_v14 = vmul.f32 %v2188_v41, %v707_v37 }
 0x1b8   : > { %1667 = vrcp.f32 %v1127_v35  ;;  %v744_v4 = vadd.f32 %v728_v14, %v2383_v51 }
 0x1b9   : > { %1669 = vrcp.f32 %v1128_v28 }
 0x1ba   : > { %v899_v59 = vpop.permute.xlu1 %898  ;;  %1671 = vpow2.f32 %v1420_v21 }
 0x1bb   : > { %v926_v8 = vmul.f32 %v2266_v25, %v899_v59 }
 0x1bd   : > { %v942_v43 = vadd.f32 %v926_v8, %v2232_v57 }
 0x1be   : > { %v1666_v17 = vpop.eup %1665 }
 0x1bf   : > { %v803_v22 = vpop.permute.xlu1 %802  ;;  %1502 = vmatmul.mubr.f32.gmra.mrb[2].mxu0 %v1666_v17 }
 0x1c0   : > { %v827_v53 = vmul.f32 %v2223_v63, %v803_v22 }
 0x1c2   : > { %v1668_v58 = vpop.eup %1667  ;;  %v843_v56 = vadd.f32 %v827_v53, %v743_v15 }
 0x1c3   : > { %v1670_v16 = vpop.eup %1669  ;;  %1514 = vmatmul.mubr.f32.gmra.mrb[2].mxu1 %v1668_v58 }
 0x1c4   : > { %v963_v23 = vpop.permute.xlu1 %962  ;;  %1516 = vmatprep.mubr.f32.mxu1 %v1670_v16  ;;  %v1672_v24 = vpop.eup %1671 }
 0x1c5   : > { %v1017_v38 = vmul.f32 %v2284_v48, %v963_v23  ;;  %v1121_v51 = vadd.f32 1.0, %v1672_v24 }
 0x1c7   : > { %v1033_v29 = vadd.f32 %v1017_v38, %v933_v7 }
 0x1c9   : > { %v1056_v2 = vadd.f32 %v2309_v31, %v1033_v29  ;;  %v775_v1 = vpop.permute.xlu1 %774 }
 0x1ca   : > { %v820_v13 = vmul.f32 %v2223_v63, %v775_v1 }
 0x1cb   : > { %v1419_v10 = vmul.f32 -1.442695, %v1056_v2 }
 0x1cc   : > { %v836_v59 = vadd.f32 %v820_v13, %v736_v42 }
 0x1cd   : > { %1673 = vpow2.f32 %v1419_v10  ;;  %v807_v20 = vpop.permute.xlu1 %806 }
 0x1ce   : > { %v828_v32 = vmul.f32 %v2223_v63, %v807_v20  ;;  %1675 = vrcp.f32 %v1121_v51 }
 0x1d0   : > { %v844_v11 = vadd.f32 %v828_v32, %v744_v4 }
 0x1d2   : > { %v999_v26 = vpop.permute.xlu1 %998  ;;  %v944_v0 = vadd.f32 %v928_v36, %v844_v11  ;;  %v1431_v36 = vld [vmem:[%s2484_s4] ss:$0 sm:$0xff] }
 0x1d3   : > { %v1026_v18 = vmul.f32 %v2284_v48, %v999_v26 }
 0x1d5   : > { %v1042_v55 = vadd.f32 %v1026_v18, %v942_v43 }
 0x1d7   : > { %v1674_v5 = vpop.eup %1673  ;;  %v1065_v47 = vadd.f32 %v2309_v31, %v1042_v55  ;;  %v903_v3 = vpop.permute.xlu1 %902 }
 0x1d8   : > { %v1120_v61 = vadd.f32 1.0, %v1674_v5  ;;  %v927_v49 = vmul.f32 %v2266_v25, %v903_v3  ;;  %v1676_v40 = vpop.eup %1675 }
 0x1d9   : > { %v1428_v62 = vmul.f32 -1.442695, %v1065_v47 }
 0x1da   : > { %1677 = vrcp.f32 %v1120_v61  ;;  %v943_v57 = vadd.f32 %v927_v49, %v843_v56 }
 0x1db   : > { %1679 = vpow2.f32 %v1428_v62  ;;  %v875_v34 = vpop.permute.xlu1 %874 }
 0x1dc   : > { %v1043_v50 = vadd.f32 %v1027_v30, %v943_v57  ;;  %v920_v37 = vmul.f32 %v2266_v25, %v875_v34 }
 0x1de   : > { %v1066_v52 = vadd.f32 %v2309_v31, %v1043_v50  ;;  %v936_v39 = vadd.f32 %v920_v37, %v836_v59 }
 0x1e0   : > { %v1429_v6 = vmul.f32 -1.442695, %v1066_v52  ;;  %v971_v28 = vpop.permute.xlu1 %970 }
 0x1e1   : > { %v1019_v35 = vmul.f32 %v2284_v48, %v971_v28 }
 0x1e2   : > { %1681 = vpow2.f32 %v1429_v6 }
 0x1e3   : > { %v1035_v44 = vadd.f32 %v1019_v35, %v2304_v12 }
 0x1e4   : > { %v1678_v17 = vpop.eup %1677  ;;  %v975_v46 = vpop.permute.xlu1 %974 }
 0x1e5   : > { %v1680_v41 = vpop.eup %1679  ;;  %v1058_v22 = vadd.f32 %v2309_v31, %v1035_v44  ;;  %v1020_v63 = vmul.f32 %v2284_v48, %v975_v46  ;;  %1504 = vmatprep.mubr.f32.mxu0 %v1678_v17 }
 0x1e6   : > { %v1129_v9 = vadd.f32 1.0, %v1680_v41  ;;  %1505 = vmatmul.mubr.f32.gmra.mrb[4].mxu0 %v1676_v40 }
 0x1e7   : > { %v1421_v60 = vmul.f32 -1.442695, %v1058_v22  ;;  %v1036_v25 = vadd.f32 %v1020_v63, %v936_v39 }
 0x1e8   : > { %1683 = vrcp.f32 %v1129_v9  ;;  %v1007_v19 = vpop.permute.xlu1 %1006 }
 0x1e9   : > { %1685 = vpow2.f32 %v1421_v60  ;;  %v1059_v58 = vadd.f32 %v2309_v31, %v1036_v25  ;;  %v1028_v12 = vmul.f32 %v2284_v48, %v1007_v19 }
 0x1eb   : > { %v1422_v16 = vmul.f32 -1.442695, %v1059_v58  ;;  %v1044_v54 = vadd.f32 %v1028_v12, %v944_v0 }
 0x1ec   : > { %v1682_v21 = vpop.eup %1681 }
 0x1ed   : > { %v1130_v23 = vadd.f32 1.0, %v1682_v21  ;;  %1687 = vpow2.f32 %v1422_v16  ;;  %v1067_v7 = vadd.f32 %v2309_v31, %v1044_v54 }
 0x1ef   : > { %1689 = vrcp.f32 %v1130_v23  ;;  %v1430_v38 = vmul.f32 -1.442695, %v1067_v7 }
 0x1f1   : > { %1691 = vpow2.f32 %v1430_v38 }
 0x1f2   : > { %v1684_v29 = vpop.eup %1683 }
 0x1f3   : > { %v1686_v2 = vpop.eup %1685  ;;  %1517 = vmatmul.mubr.f32.gmra.mrb[4].mxu1 %v1684_v29 }
 0x1f4   : > { %v1122_v1 = vadd.f32 1.0, %v1686_v2 }
 0x1f6   : > { %1693 = vrcp.f32 %v1122_v1 }
 0x1f7   : > { %v1688_v14 = vpop.eup %1687 }
 0x1f8   : > { %v1123_v10 = vadd.f32 1.0, %v1688_v14 }
 0x1f9   : > { %v1690_v20 = vpop.eup %1689 }
 0x1fa   : > { %1695 = vrcp.f32 %v1123_v10  ;;  %1519 = vmatprep.mubr.f32.mxu1 %v1690_v20 }
 0x1fb   : > { %v1692_v48 = vpop.eup %1691 }
 0x1fc   : > { %v1131_v4 = vadd.f32 1.0, %v1692_v48 }
 0x1fe   : > { %1697 = vrcp.f32 %v1131_v4 }
 0x200   : > { %v1694_v32 = vpop.eup %1693 }
 0x201   : > { %1507 = vmatprep.mubr.f32.mxu0 %v1694_v32 }
 0x204   : > { %v1696_v31 = vpop.eup %1695 }
 0x205   : > { %1508 = vmatmul.mubr.f32.gmra.mrb[6].mxu0 %v1696_v31 }
 0x208   : > { %v1698_v8 = vpop.eup %1697 }
 0x209   : > { %1520 = vmatmul.mubr.f32.gmra.mrb[6].mxu1 %v1698_v8 }
 0x247   : > { %v1500_v11 = vpop.f32.mrb[0].mxu0 }
 0x248   : > { %v1259_v24 = vadd.f32 %v1500_v11, %v1431_v36  ;;  %v1253_v45 = vpop.f32.mrb[1].mxu0 }
 0x249   : > { %v1254_v26 = vadd.f32 %v1431_v36, %v1253_v45 }
 0x24a   : > { %1334 = vst.msk [vmem:[%s2443_s19 + $0x8] sm:$0xff] %vm1332_vm0, %v1259_v24 }
 0x24b   : > { %1333 = vst.msk [vmem:[%s2443_s19] sm:$0xff] %vm1332_vm0, %v1254_v26 }
 0x24e   : > { %v1512_v0 = vpop.f32.mrb[0].mxu1 }
 0x24f   : > { %v1299_v43 = vadd.f32 %v1512_v0, %v1431_v36  ;;  %v1293_v18 = vpop.f32.mrb[1].mxu1 }
 0x250   : > { %v1294_v53 = vadd.f32 %v1431_v36, %v1293_v18 }
 0x251   : > { %1342 = vst.msk [vmem:[%s2443_s19 + $0x48] sm:$0xff] %vm1332_vm0, %v1299_v43 }
 0x252   : > { %1341 = vst.msk [vmem:[%s2443_s19 + $0x40] sm:$0xff] %vm1332_vm0, %v1294_v53 }
 0x292   : > { %v1503_v51 = vpop.f32.mrb[2].mxu0 }
 0x293   : > { %v1269_v55 = vadd.f32 %v1503_v51, %v1431_v36  ;;  %v1263_v15 = vpop.f32.mrb[3].mxu0 }
 0x294   : > { %v1264_v5 = vadd.f32 %v1431_v36, %v1263_v15 }
 0x295   : > { %1336 = vst.msk [vmem:[%s2443_s19 + $0x18] sm:$0xff] %vm1332_vm0, %v1269_v55 }
 0x296   : > { %1335 = vst.msk [vmem:[%s2443_s19 + $0x10] sm:$0xff] %vm1332_vm0, %v1264_v5  ;;  %v1515_v47 = vpop.f32.mrb[2].mxu1 }
 0x297   : > { %v1309_v3 = vadd.f32 %v1515_v47, %v1431_v36  ;;  %v1303_v27 = vpop.f32.mrb[3].mxu1 }
 0x298   : > { %v1304_v56 = vadd.f32 %v1431_v36, %v1303_v27 }
 0x299   : > { %1344 = vst.msk [vmem:[%s2443_s19 + $0x58] sm:$0xff] %vm1332_vm0, %v1309_v3 }
 0x29a   : > { %1343 = vst.msk [vmem:[%s2443_s19 + $0x50] sm:$0xff] %vm1332_vm0, %v1304_v56 }
 0x2b9   : > { %v1506_v61 = vpop.f32.mrb[4].mxu0 }
 0x2ba   : > { %v1279_v49 = vadd.f32 %v1506_v61, %v1431_v36  ;;  %v1273_v62 = vpop.f32.mrb[5].mxu0 }
 0x2bb   : > { %v1274_v57 = vadd.f32 %v1431_v36, %v1273_v62 }
 0x2bc   : > { %1338 = vst.msk [vmem:[%s2443_s19 + $0x28] sm:$0xff] %vm1332_vm0, %v1279_v49 }
 0x2bd   : > { %1337 = vst.msk [vmem:[%s2443_s19 + $0x20] sm:$0xff] %vm1332_vm0, %v1274_v57 }
 0x2c6   : > { %v1518_v30 = vpop.f32.mrb[4].mxu1 }
 0x2c7   : > { %v1319_v34 = vadd.f32 %v1518_v30, %v1431_v36  ;;  %v1313_v50 = vpop.f32.mrb[5].mxu1 }
 0x2c8   : > { %v1314_v33 = vadd.f32 %v1431_v36, %v1313_v50 }
 0x2c9   : > { %1346 = vst.msk [vmem:[%s2443_s19 + $0x68] sm:$0xff] %vm1332_vm0, %v1319_v34 }
 0x2ca   : > { %1345 = vst.msk [vmem:[%s2443_s19 + $0x60] sm:$0xff] %vm1332_vm0, %v1314_v33 }
 0x2d8   : > { %v1509_v52 = vpop.f32.mrb[6].mxu0 }
 0x2d9   : > { %v1289_v13 = vadd.f32 %v1509_v52, %v1431_v36  ;;  %v1283_v6 = vpop.f32.mrb[7].mxu0 }
 0x2da   : > { %v1284_v28 = vadd.f32 %v1431_v36, %v1283_v6 }
 0x2db   : > { %1340 = vst.msk [vmem:[%s2443_s19 + $0x38] sm:$0xff] %vm1332_vm0, %v1289_v13 }
 0x2dc   : > { %1339 = vst.msk [vmem:[%s2443_s19 + $0x30] sm:$0xff] %vm1332_vm0, %v1284_v28  ;;  %v1521_v42 = vpop.f32.mrb[6].mxu1 }
 0x2dd   : > { %v1329_v37 = vadd.f32 %v1521_v42, %v1431_v36  ;;  %v1323_v35 = vpop.f32.mrb[7].mxu1 }
 0x2de   : > { %v1324_v40 = vadd.f32 %v1431_v36, %v1323_v35 }
 0x2df   : > { %1348 = vst.msk [vmem:[%s2443_s19 + $0x78] sm:$0xff] %vm1332_vm0, %v1329_v37 }
 0x2e0   : > { %1347 = vst.msk [vmem:[%s2443_s19 + $0x70] sm:$0xff] %vm1332_vm0, %v1324_v40 }
 0x2e1 PF: > { %s15_s18 = sadd.s32 1, %s1708_s18  }
 0x2e2   : > { %p12_p4 = scmp.ge.s32.totalorder %s15_s18, 4  }
 0x2e4   :  { %14 = sbr.rel (!%p12_p4) target bundleno = 1 (0x1), region = 70 }

</bundles_post_ra>
